<compile_context>
chip_gen: v7x
topology: tpu7x:2x2x1
jax: 0.10.0
libtpu: 0.0.40
codegen_flags: <defaults>
</compile_context>

<pallas_src>
import math
from functools import partial

import jax
import jax.numpy as jnp
from jax.experimental import pallas as pl
from jax.experimental.pallas import tpu as pltpu


def _round_up(x, m):
    return ((x + m - 1) // m) * m


def _gelu_exact(h):
    # torch.nn.GELU default = exact (erf-based) GELU, computed in f32.
    return 0.5 * h * (1.0 + jax.lax.erf(h * (1.0 / math.sqrt(2.0))))


def _layernorm(h, g, b, eps=1e-5):
    mu = jnp.mean(h, axis=-1, keepdims=True)
    var = jnp.mean((h - mu) ** 2, axis=-1, keepdims=True)
    return (h - mu) * jax.lax.rsqrt(var + eps) * g + b


def _bytenet_kernel(L, d_h, kernel_size, dilation, pad, pad_top,
                    x_ref,
                    ln1g_ref, ln1b_ref, w1_ref, b1_ref,
                    ln2g_ref, ln2b_ref, wcf_ref, bc_ref,
                    ln3g_ref, ln3b_ref, w2_ref, b2_ref,
                    o_ref, pad_scr):
    x = x_ref[0].astype(jnp.float32)                                   # (L, d_in)

    # --- sequence1: LayerNorm -> GELU -> 1x1 conv -> LayerNorm -> GELU ---
    h = _gelu_exact(_layernorm(x, ln1g_ref[...], ln1b_ref[...]))
    h = jnp.dot(h.astype(jnp.bfloat16), w1_ref[...],
                preferred_element_type=jnp.float32) + b1_ref[...]
    h = _gelu_exact(_layernorm(h, ln2g_ref[...], ln2b_ref[...]))       # (L, d_h) f32

    # --- dilated Conv1d, all K taps fused into one MXU matmul ---
    # Zero only the halo rows (interior is fully overwritten below).
    if pad > 0:
        pad_scr[pl.ds(0, pad_top), :] = jnp.zeros((pad_top, d_h), pad_scr.dtype)
        pad_scr[pl.ds(pad_top + L, pad_top), :] = jnp.zeros((pad_top, d_h), pad_scr.dtype)
    # Sublane-aligned store of h at row offset pad_top.
    pad_scr[pl.ds(pad_top, L), :] = h.astype(pad_scr.dtype)

    base = pad_top - pad                                               # static int >= 0
    taps = [pad_scr[pl.ds(base + k * dilation, L), :] for k in range(kernel_size)]
    conv_in = jnp.concatenate(taps, axis=-1)                           # (L, K*d_h) bf16
    acc = jnp.dot(conv_in, wcf_ref[...],
                  preferred_element_type=jnp.float32) + bc_ref[...]    # (L, d_h) f32

    # --- sequence2: LayerNorm -> GELU -> 1x1 conv, then residual add ---
    h = _gelu_exact(_layernorm(acc, ln3g_ref[...], ln3b_ref[...]))
    h = jnp.dot(h.astype(jnp.bfloat16), w2_ref[...],
                preferred_element_type=jnp.float32) + b2_ref[...]
    o_ref[0] = (x + h).astype(o_ref.dtype)


def bytenet_block(x, params, *, kernel_size, dilation):
    N, L, d_in = x.shape
    d_h = params["w1"].shape[1]
    d_out = params["w2"].shape[1]
    assert kernel_size % 2 == 1, "odd kernel_size keeps sequence length (as in ByteNet)"
    assert d_out == d_in, "residual add requires d_out == d_in"
    assert L % 8 == 0, "L should be sublane-aligned"
    pad = dilation * (kernel_size - 1) // 2
    # Align the h write offset to the bf16 (16, 128) packing.
    pad_top = _round_up(pad, 16)

    # Fuse the K conv taps' weights: (K, d_h, d_h) -> (K*d_h, d_h), row k*d_h + c.
    wc_fused = params["wc"].reshape(kernel_size * d_h, d_h)

    def full_spec(a):
        nd = a.ndim
        return pl.BlockSpec(a.shape, lambda b, _nd=nd: (0,) * _nd)

    param_args = [params["ln1_g"], params["ln1_b"], params["w1"], params["b1"],
                  params["ln2_g"], params["ln2_b"], wc_fused, params["bc"],
                  params["ln3_g"], params["ln3_b"], params["w2"], params["b2"]]

    kernel = partial(_bytenet_kernel, L, d_h, kernel_size, dilation, pad, pad_top)

    return pl.pallas_call(
        kernel,
        out_shape=jax.ShapeDtypeStruct((N, L, d_out), x.dtype),
        grid_spec=pltpu.PrefetchScalarGridSpec(
            num_scalar_prefetch=0,
            grid=(N,),
            in_specs=[pl.BlockSpec((1, L, d_in), lambda b: (b, 0, 0))]
                     + [full_spec(a) for a in param_args],
            out_specs=pl.BlockSpec((1, L, d_out), lambda b: (b, 0, 0)),
            scratch_shapes=[pltpu.VMEM((L + 2 * pad_top, d_h), jnp.bfloat16)],
        ),
        compiler_params=pltpu.CompilerParams(
            dimension_semantics=("parallel",),
            vmem_limit_bytes=48 * 1024 * 1024),
    )(x, *param_args)


def bytenet_block_ref(x, params, *, kernel_size, dilation):
    """Pure-JAX reference mirroring the kernel's math (bf16 matmul inputs, f32 accum)."""
    N, L, d_in = x.shape
    d_h = params["w1"].shape[1]
    pad = dilation * (kernel_size - 1) // 2
    bf16 = jnp.bfloat16

    h = _gelu_exact(_layernorm(x.astype(jnp.float32), params["ln1_g"], params["ln1_b"]))
    h = jnp.einsum("nlc,cd->nld", h.astype(bf16), params["w1"],
                   preferred_element_type=jnp.float32) + params["b1"]
    h = _gelu_exact(_layernorm(h, params["ln2_g"], params["ln2_b"]))

    hp = jnp.pad(h.astype(bf16), ((0, 0), (pad, pad), (0, 0)))
    acc = jnp.zeros((N, L, d_h), jnp.float32) + params["bc"]
    for k in range(kernel_size):
        acc = acc + jnp.einsum("nlc,cd->nld",
                               hp[:, k * dilation:k * dilation + L, :],
                               params["wc"][k],
                               preferred_element_type=jnp.float32)

    h = _gelu_exact(_layernorm(acc, params["ln3_g"], params["ln3_b"]))
    h = jnp.einsum("nlc,cd->nld", h.astype(bf16), params["w2"],
                   preferred_element_type=jnp.float32) + params["b2"]
    return x + h


def init_params(key, d_in, d_h, d_out, kernel_size):
    ks = jax.random.split(key, 12)
    s = 0.1
    bf16 = jnp.bfloat16
    return {
        # LayerNorm(d_in) — kept in f32
        "ln1_g": 1.0 + s * jax.random.normal(ks[0], (1, d_in), jnp.float32),
        "ln1_b": s * jax.random.normal(ks[1], (1, d_in), jnp.float32),
        # PositionFeedForward(d_in, d_h): Conv1d(d_in, d_h, 1) -> matmul, bf16 weight
        "w1": (s * jax.random.normal(ks[2], (d_in, d_h), jnp.float32)).astype(bf16),
        "b1": s * jax.random.normal(ks[3], (1, d_h), jnp.float32),
        # LayerNorm(d_h)
        "ln2_g": 1.0 + s * jax.random.normal(ks[4], (1, d_h), jnp.float32),
        "ln2_b": s * jax.random.normal(ks[5], (1, d_h), jnp.float32),
        # ConvLayer(d_h, d_h, kernel_size, dilation): weight (K, C_in, C_out), bf16
        "wc": (s * jax.random.normal(ks[6], (kernel_size, d_h, d_h), jnp.float32)).astype(bf16),
        "bc": s * jax.random.normal(ks[7], (1, d_h), jnp.float32),
        # LayerNorm(d_h)
        "ln3_g": 1.0 + s * jax.random.normal(ks[8], (1, d_h), jnp.float32),
        "ln3_b": s * jax.random.normal(ks[9], (1, d_h), jnp.float32),
        # PositionFeedForward(d_h, d_out), bf16 weight
        "w2": (s * jax.random.normal(ks[10], (d_h, d_out), jnp.float32)).astype(bf16),
        "b2": s * jax.random.normal(ks[11], (1, d_out), jnp.float32),
    }


if __name__ == "__main__":
    # Small but TPU-friendly shapes: channels are lane-dense (multiple of 128),
    # L is sublane-aligned. Residual add requires d_out == d_in.
    N, L, d_in, d_h = 2, 64, 128, 128
    d_out = d_in
    kernel_size, dilation = 5, 2

    key = jax.random.PRNGKey(0)
    kx, kp = jax.random.split(key)
    x = jax.random.normal(kx, (N, L, d_in), jnp.float32)
    params = init_params(kp, d_in, d_h, d_out, kernel_size)

    out = jax.block_until_ready(
        bytenet_block(x, params, kernel_size=kernel_size, dilation=dilation))

    ref = bytenet_block_ref(x, params, kernel_size=kernel_size, dilation=dilation)
    if not jnp.allclose(out, ref, atol=5e-3, rtol=5e-3):
        max_err = jnp.max(jnp.abs(out - ref))
        raise AssertionError(
            f"Pallas kernel output mismatch vs JAX reference (max abs err {max_err})")

    print("KERNEL_OK")
</pallas_src>

<mosaic_0001>
module attributes {stable_mosaic.version = 11 : i64} {
  func.func @_bytenet_kernel(%arg0: i32, %arg1: memref<1x64x128xf32, #tpu.memory_space<vmem>>, %arg2: memref<1x128xf32, #tpu.memory_space<vmem>>, %arg3: memref<1x128xf32, #tpu.memory_space<vmem>>, %arg4: memref<128x128xbf16, #tpu.memory_space<vmem>>, %arg5: memref<1x128xf32, #tpu.memory_space<vmem>>, %arg6: memref<1x128xf32, #tpu.memory_space<vmem>>, %arg7: memref<1x128xf32, #tpu.memory_space<vmem>>, %arg8: memref<640x128xbf16, #tpu.memory_space<vmem>>, %arg9: memref<1x128xf32, #tpu.memory_space<vmem>>, %arg10: memref<1x128xf32, #tpu.memory_space<vmem>>, %arg11: memref<1x128xf32, #tpu.memory_space<vmem>>, %arg12: memref<128x128xbf16, #tpu.memory_space<vmem>>, %arg13: memref<1x128xf32, #tpu.memory_space<vmem>>, %arg14: memref<1x64x128xf32, #tpu.memory_space<vmem>>, %arg15: memref<96x128xbf16, #tpu.memory_space<vmem>>) attributes {dimension_semantics = [#tpu.dimension_semantics<parallel>], iteration_bounds = array<i64: 2>, scalar_prefetch = 0 : i64, scratch_operands = 1 : i64, tpu.core_type = #tpu.core_type<tc>, window_params = [{transform_indices = @transform_0, window_bounds = array<i64: 1, 64, 128>}, {pipeline_mode = #tpu.pipeline_mode<synchronous>, transform_indices = @transform_1, window_bounds = array<i64: 1, 128>}, {pipeline_mode = #tpu.pipeline_mode<synchronous>, transform_indices = @transform_2, window_bounds = array<i64: 1, 128>}, {pipeline_mode = #tpu.pipeline_mode<synchronous>, transform_indices = @transform_3, window_bounds = array<i64: 128, 128>}, {pipeline_mode = #tpu.pipeline_mode<synchronous>, transform_indices = @transform_4, window_bounds = array<i64: 1, 128>}, {pipeline_mode = #tpu.pipeline_mode<synchronous>, transform_indices = @transform_5, window_bounds = array<i64: 1, 128>}, {pipeline_mode = #tpu.pipeline_mode<synchronous>, transform_indices = @transform_6, window_bounds = array<i64: 1, 128>}, {pipeline_mode = #tpu.pipeline_mode<synchronous>, transform_indices = @transform_7, window_bounds = array<i64: 640, 128>}, {pipeline_mode = #tpu.pipeline_mode<synchronous>, transform_indices = @transform_8, window_bounds = array<i64: 1, 128>}, {pipeline_mode = #tpu.pipeline_mode<synchronous>, transform_indices = @transform_9, window_bounds = array<i64: 1, 128>}, {pipeline_mode = #tpu.pipeline_mode<synchronous>, transform_indices = @transform_10, window_bounds = array<i64: 1, 128>}, {pipeline_mode = #tpu.pipeline_mode<synchronous>, transform_indices = @transform_11, window_bounds = array<i64: 128, 128>}, {pipeline_mode = #tpu.pipeline_mode<synchronous>, transform_indices = @transform_12, window_bounds = array<i64: 1, 128>}, {transform_indices = @transform_13, window_bounds = array<i64: 1, 64, 128>}]} {
    %c0 = arith.constant 0 : index
    %c0_0 = arith.constant 0 : index
    %c0_1 = arith.constant 0 : index
    %0 = vector.load %arg1[%c0, %c0_0, %c0_1] : memref<1x64x128xf32, #tpu.memory_space<vmem>>, vector<1x64x128xf32>
    %1 = vector.shape_cast %0 : vector<1x64x128xf32> to vector<64x128xf32>
    %c0_2 = arith.constant 0 : index
    %c0_3 = arith.constant 0 : index
    %2 = vector.load %arg2[%c0_2, %c0_3] : memref<1x128xf32, #tpu.memory_space<vmem>>, vector<1x128xf32>
    %c0_4 = arith.constant 0 : index
    %c0_5 = arith.constant 0 : index
    %3 = vector.load %arg3[%c0_4, %c0_5] : memref<1x128xf32, #tpu.memory_space<vmem>>, vector<1x128xf32>
    %cst = arith.constant dense<0.000000e+00> : vector<64xf32>
    %4 = vector.multi_reduction <add>, %1, %cst [1] : vector<64x128xf32> to vector<64xf32>
    %5 = vector.shape_cast %4 : vector<64xf32> to vector<64x1xf32>
    %cst_6 = arith.constant 1.280000e+02 : f32
    %6 = vector.broadcast %cst_6 : f32 to vector<64x1xf32>
    %7 = arith.divf %5, %6 : vector<64x1xf32>
    %8 = vector.broadcast %7 : vector<64x1xf32> to vector<64x128xf32>
    %9 = arith.subf %1, %8 : vector<64x128xf32>
    %10 = arith.mulf %9, %9 : vector<64x128xf32>
    %cst_7 = arith.constant dense<0.000000e+00> : vector<64xf32>
    %11 = vector.multi_reduction <add>, %10, %cst_7 [1] : vector<64x128xf32> to vector<64xf32>
    %12 = vector.shape_cast %11 : vector<64xf32> to vector<64x1xf32>
    %cst_8 = arith.constant 1.280000e+02 : f32
    %13 = vector.broadcast %cst_8 : f32 to vector<64x1xf32>
    %14 = arith.divf %12, %13 : vector<64x1xf32>
    %15 = vector.broadcast %7 : vector<64x1xf32> to vector<64x128xf32>
    %16 = arith.subf %1, %15 : vector<64x128xf32>
    %cst_9 = arith.constant 9.99999974E-6 : f32
    %17 = vector.broadcast %cst_9 : f32 to vector<64x1xf32>
    %18 = arith.addf %14, %17 : vector<64x1xf32>
    %19 = math.rsqrt %18 : vector<64x1xf32>
    %20 = vector.broadcast %19 : vector<64x1xf32> to vector<64x128xf32>
    %21 = arith.mulf %16, %20 : vector<64x128xf32>
    %22 = vector.broadcast %2 : vector<1x128xf32> to vector<64x128xf32>
    %23 = arith.mulf %21, %22 : vector<64x128xf32>
    %24 = vector.broadcast %3 : vector<1x128xf32> to vector<64x128xf32>
    %25 = arith.addf %23, %24 : vector<64x128xf32>
    %cst_10 = arith.constant 5.000000e-01 : f32
    %26 = vector.broadcast %cst_10 : f32 to vector<64x128xf32>
    %27 = arith.mulf %26, %25 : vector<64x128xf32>
    %cst_11 = arith.constant 0.707106769 : f32
    %28 = vector.broadcast %cst_11 : f32 to vector<64x128xf32>
    %29 = arith.mulf %25, %28 : vector<64x128xf32>
    %30 = math.erf %29 : vector<64x128xf32>
    %cst_12 = arith.constant 1.000000e+00 : f32
    %31 = vector.broadcast %cst_12 : f32 to vector<64x128xf32>
    %32 = arith.addf %31, %30 : vector<64x128xf32>
    %33 = arith.mulf %27, %32 : vector<64x128xf32>
    %34 = arith.truncf %33 : vector<64x128xf32> to vector<64x128xbf16>
    %c0_13 = arith.constant 0 : index
    %c0_14 = arith.constant 0 : index
    %35 = vector.load %arg4[%c0_13, %c0_14] : memref<128x128xbf16, #tpu.memory_space<vmem>>, vector<128x128xbf16>
    %cst_15 = arith.constant dense<0.000000e+00> : vector<64x128xf32>
    %36 = tpu.matmul %34, %35, %cst_15 {dimension_numbers = #tpu.dot_dimension_numbers<[1], [0], [0], [1], [0, 0, 1, 1], [], []>} : vector<64x128xbf16>, vector<128x128xbf16>, vector<64x128xf32> -> vector<64x128xf32>
    %c0_16 = arith.constant 0 : index
    %c0_17 = arith.constant 0 : index
    %37 = vector.load %arg5[%c0_16, %c0_17] : memref<1x128xf32, #tpu.memory_space<vmem>>, vector<1x128xf32>
    %38 = vector.broadcast %37 : vector<1x128xf32> to vector<64x128xf32>
    %39 = arith.addf %36, %38 : vector<64x128xf32>
    %c0_18 = arith.constant 0 : index
    %c0_19 = arith.constant 0 : index
    %40 = vector.load %arg6[%c0_18, %c0_19] : memref<1x128xf32, #tpu.memory_space<vmem>>, vector<1x128xf32>
    %c0_20 = arith.constant 0 : index
    %c0_21 = arith.constant 0 : index
    %41 = vector.load %arg7[%c0_20, %c0_21] : memref<1x128xf32, #tpu.memory_space<vmem>>, vector<1x128xf32>
    %cst_22 = arith.constant dense<0.000000e+00> : vector<64xf32>
    %42 = vector.multi_reduction <add>, %39, %cst_22 [1] : vector<64x128xf32> to vector<64xf32>
    %43 = vector.shape_cast %42 : vector<64xf32> to vector<64x1xf32>
    %cst_23 = arith.constant 1.280000e+02 : f32
    %44 = vector.broadcast %cst_23 : f32 to vector<64x1xf32>
    %45 = arith.divf %43, %44 : vector<64x1xf32>
    %46 = vector.broadcast %45 : vector<64x1xf32> to vector<64x128xf32>
    %47 = arith.subf %39, %46 : vector<64x128xf32>
    %48 = arith.mulf %47, %47 : vector<64x128xf32>
    %cst_24 = arith.constant dense<0.000000e+00> : vector<64xf32>
    %49 = vector.multi_reduction <add>, %48, %cst_24 [1] : vector<64x128xf32> to vector<64xf32>
    %50 = vector.shape_cast %49 : vector<64xf32> to vector<64x1xf32>
    %cst_25 = arith.constant 1.280000e+02 : f32
    %51 = vector.broadcast %cst_25 : f32 to vector<64x1xf32>
    %52 = arith.divf %50, %51 : vector<64x1xf32>
    %53 = vector.broadcast %45 : vector<64x1xf32> to vector<64x128xf32>
    %54 = arith.subf %39, %53 : vector<64x128xf32>
    %cst_26 = arith.constant 9.99999974E-6 : f32
    %55 = vector.broadcast %cst_26 : f32 to vector<64x1xf32>
    %56 = arith.addf %52, %55 : vector<64x1xf32>
    %57 = math.rsqrt %56 : vector<64x1xf32>
    %58 = vector.broadcast %57 : vector<64x1xf32> to vector<64x128xf32>
    %59 = arith.mulf %54, %58 : vector<64x128xf32>
    %60 = vector.broadcast %40 : vector<1x128xf32> to vector<64x128xf32>
    %61 = arith.mulf %59, %60 : vector<64x128xf32>
    %62 = vector.broadcast %41 : vector<1x128xf32> to vector<64x128xf32>
    %63 = arith.addf %61, %62 : vector<64x128xf32>
    %cst_27 = arith.constant 5.000000e-01 : f32
    %64 = vector.broadcast %cst_27 : f32 to vector<64x128xf32>
    %65 = arith.mulf %64, %63 : vector<64x128xf32>
    %cst_28 = arith.constant 0.707106769 : f32
    %66 = vector.broadcast %cst_28 : f32 to vector<64x128xf32>
    %67 = arith.mulf %63, %66 : vector<64x128xf32>
    %68 = math.erf %67 : vector<64x128xf32>
    %cst_29 = arith.constant 1.000000e+00 : f32
    %69 = vector.broadcast %cst_29 : f32 to vector<64x128xf32>
    %70 = arith.addf %69, %68 : vector<64x128xf32>
    %71 = arith.mulf %65, %70 : vector<64x128xf32>
    %cst_30 = arith.constant 0.000000e+00 : bf16
    %72 = vector.broadcast %cst_30 : bf16 to vector<16x128xbf16>
    %c0_31 = arith.constant 0 : index
    %c0_32 = arith.constant 0 : index
    %73 = vector.load %arg15[%c0_31, %c0_32] : memref<96x128xbf16, #tpu.memory_space<vmem>>, vector<16x128xbf16>
    tpu.vector_store %arg15[%c0_31, %c0_32], %72 {strides = array<i32>} : memref<96x128xbf16, #tpu.memory_space<vmem>>, vector<16x128xbf16>,
    %cst_33 = arith.constant 0.000000e+00 : bf16
    %74 = vector.broadcast %cst_33 : bf16 to vector<16x128xbf16>
    %c80 = arith.constant 80 : index
    %c0_34 = arith.constant 0 : index
    %75 = vector.load %arg15[%c80, %c0_34] : memref<96x128xbf16, #tpu.memory_space<vmem>>, vector<16x128xbf16>
    tpu.vector_store %arg15[%c80, %c0_34], %74 {strides = array<i32>} : memref<96x128xbf16, #tpu.memory_space<vmem>>, vector<16x128xbf16>,
    %76 = arith.truncf %71 : vector<64x128xf32> to vector<64x128xbf16>
    %c16 = arith.constant 16 : index
    %c0_35 = arith.constant 0 : index
    %77 = vector.load %arg15[%c16, %c0_35] : memref<96x128xbf16, #tpu.memory_space<vmem>>, vector<64x128xbf16>
    tpu.vector_store %arg15[%c16, %c0_35], %76 {strides = array<i32>} : memref<96x128xbf16, #tpu.memory_space<vmem>>, vector<64x128xbf16>,
    %c12 = arith.constant 12 : index
    %c0_36 = arith.constant 0 : index
    %78 = vector.load %arg15[%c12, %c0_36] : memref<96x128xbf16, #tpu.memory_space<vmem>>, vector<64x128xbf16>
    %c14 = arith.constant 14 : index
    %c0_37 = arith.constant 0 : index
    %79 = vector.load %arg15[%c14, %c0_37] : memref<96x128xbf16, #tpu.memory_space<vmem>>, vector<64x128xbf16>
    %c16_38 = arith.constant 16 : index
    %c0_39 = arith.constant 0 : index
    %80 = vector.load %arg15[%c16_38, %c0_39] : memref<96x128xbf16, #tpu.memory_space<vmem>>, vector<64x128xbf16>
    %c18 = arith.constant 18 : index
    %c0_40 = arith.constant 0 : index
    %81 = vector.load %arg15[%c18, %c0_40] : memref<96x128xbf16, #tpu.memory_space<vmem>>, vector<64x128xbf16>
    %c20 = arith.constant 20 : index
    %c0_41 = arith.constant 0 : index
    %82 = vector.load %arg15[%c20, %c0_41] : memref<96x128xbf16, #tpu.memory_space<vmem>>, vector<64x128xbf16>
    %83 = tpu.concatenate %78, %79, %80, %81, %82 in 1 : vector<64x128xbf16>, vector<64x128xbf16>, vector<64x128xbf16>, vector<64x128xbf16>, vector<64x128xbf16> -> vector<64x640xbf16>
    %c0_42 = arith.constant 0 : index
    %c0_43 = arith.constant 0 : index
    %84 = vector.load %arg8[%c0_42, %c0_43] : memref<640x128xbf16, #tpu.memory_space<vmem>>, vector<640x128xbf16>
    %cst_44 = arith.constant dense<0.000000e+00> : vector<64x128xf32>
    %85 = tpu.matmul %83, %84, %cst_44 {dimension_numbers = #tpu.dot_dimension_numbers<[1], [0], [0], [1], [0, 0, 1, 1], [], []>} : vector<64x640xbf16>, vector<640x128xbf16>, vector<64x128xf32> -> vector<64x128xf32>
    %c0_45 = arith.constant 0 : index
    %c0_46 = arith.constant 0 : index
    %86 = vector.load %arg9[%c0_45, %c0_46] : memref<1x128xf32, #tpu.memory_space<vmem>>, vector<1x128xf32>
    %87 = vector.broadcast %86 : vector<1x128xf32> to vector<64x128xf32>
    %88 = arith.addf %85, %87 : vector<64x128xf32>
    %c0_47 = arith.constant 0 : index
    %c0_48 = arith.constant 0 : index
    %89 = vector.load %arg10[%c0_47, %c0_48] : memref<1x128xf32, #tpu.memory_space<vmem>>, vector<1x128xf32>
    %c0_49 = arith.constant 0 : index
    %c0_50 = arith.constant 0 : index
    %90 = vector.load %arg11[%c0_49, %c0_50] : memref<1x128xf32, #tpu.memory_space<vmem>>, vector<1x128xf32>
    %cst_51 = arith.constant dense<0.000000e+00> : vector<64xf32>
    %91 = vector.multi_reduction <add>, %88, %cst_51 [1] : vector<64x128xf32> to vector<64xf32>
    %92 = vector.shape_cast %91 : vector<64xf32> to vector<64x1xf32>
    %cst_52 = arith.constant 1.280000e+02 : f32
    %93 = vector.broadcast %cst_52 : f32 to vector<64x1xf32>
    %94 = arith.divf %92, %93 : vector<64x1xf32>
    %95 = vector.broadcast %94 : vector<64x1xf32> to vector<64x128xf32>
    %96 = arith.subf %88, %95 : vector<64x128xf32>
    %97 = arith.mulf %96, %96 : vector<64x128xf32>
    %cst_53 = arith.constant dense<0.000000e+00> : vector<64xf32>
    %98 = vector.multi_reduction <add>, %97, %cst_53 [1] : vector<64x128xf32> to vector<64xf32>
    %99 = vector.shape_cast %98 : vector<64xf32> to vector<64x1xf32>
    %cst_54 = arith.constant 1.280000e+02 : f32
    %100 = vector.broadcast %cst_54 : f32 to vector<64x1xf32>
    %101 = arith.divf %99, %100 : vector<64x1xf32>
    %102 = vector.broadcast %94 : vector<64x1xf32> to vector<64x128xf32>
    %103 = arith.subf %88, %102 : vector<64x128xf32>
    %cst_55 = arith.constant 9.99999974E-6 : f32
    %104 = vector.broadcast %cst_55 : f32 to vector<64x1xf32>
    %105 = arith.addf %101, %104 : vector<64x1xf32>
    %106 = math.rsqrt %105 : vector<64x1xf32>
    %107 = vector.broadcast %106 : vector<64x1xf32> to vector<64x128xf32>
    %108 = arith.mulf %103, %107 : vector<64x128xf32>
    %109 = vector.broadcast %89 : vector<1x128xf32> to vector<64x128xf32>
    %110 = arith.mulf %108, %109 : vector<64x128xf32>
    %111 = vector.broadcast %90 : vector<1x128xf32> to vector<64x128xf32>
    %112 = arith.addf %110, %111 : vector<64x128xf32>
    %cst_56 = arith.constant 5.000000e-01 : f32
    %113 = vector.broadcast %cst_56 : f32 to vector<64x128xf32>
    %114 = arith.mulf %113, %112 : vector<64x128xf32>
    %cst_57 = arith.constant 0.707106769 : f32
    %115 = vector.broadcast %cst_57 : f32 to vector<64x128xf32>
    %116 = arith.mulf %112, %115 : vector<64x128xf32>
    %117 = math.erf %116 : vector<64x128xf32>
    %cst_58 = arith.constant 1.000000e+00 : f32
    %118 = vector.broadcast %cst_58 : f32 to vector<64x128xf32>
    %119 = arith.addf %118, %117 : vector<64x128xf32>
    %120 = arith.mulf %114, %119 : vector<64x128xf32>
    %121 = arith.truncf %120 : vector<64x128xf32> to vector<64x128xbf16>
    %c0_59 = arith.constant 0 : index
    %c0_60 = arith.constant 0 : index
    %122 = vector.load %arg12[%c0_59, %c0_60] : memref<128x128xbf16, #tpu.memory_space<vmem>>, vector<128x128xbf16>
    %cst_61 = arith.constant dense<0.000000e+00> : vector<64x128xf32>
    %123 = tpu.matmul %121, %122, %cst_61 {dimension_numbers = #tpu.dot_dimension_numbers<[1], [0], [0], [1], [0, 0, 1, 1], [], []>} : vector<64x128xbf16>, vector<128x128xbf16>, vector<64x128xf32> -> vector<64x128xf32>
    %c0_62 = arith.constant 0 : index
    %c0_63 = arith.constant 0 : index
    %124 = vector.load %arg13[%c0_62, %c0_63] : memref<1x128xf32, #tpu.memory_space<vmem>>, vector<1x128xf32>
    %125 = vector.broadcast %124 : vector<1x128xf32> to vector<64x128xf32>
    %126 = arith.addf %123, %125 : vector<64x128xf32>
    %127 = arith.addf %1, %126 : vector<64x128xf32>
    %c0_64 = arith.constant 0 : index
    %c0_65 = arith.constant 0 : index
    %c0_66 = arith.constant 0 : index
    %128 = vector.load %arg14[%c0_64, %c0_65, %c0_66] : memref<1x64x128xf32, #tpu.memory_space<vmem>>, vector<1x64x128xf32>
    %129 = vector.shape_cast %128 : vector<1x64x128xf32> to vector<64x128xf32>
    %130 = vector.shape_cast %127 : vector<64x128xf32> to vector<1x64x128xf32>
    tpu.vector_store %arg14[%c0_64, %c0_65, %c0_66], %130 {strides = array<i32>} : memref<1x64x128xf32, #tpu.memory_space<vmem>>, vector<1x64x128xf32>,
    return
  }
  func.func @transform_0(%arg0: i32) -> (i32, i32, i32) {
    %c0_i32 = arith.constant 0 : i32
    %c0_i32_0 = arith.constant 0 : i32
    %c0_i32_1 = arith.constant 0 : i32
    return %arg0, %c0_i32, %c0_i32_0 : i32, i32, i32
  }
  func.func @transform_1(%arg0: i32) -> (i32, i32) {
    %c0_i32 = arith.constant 0 : i32
    %c0_i32_0 = arith.constant 0 : i32
    %c0_i32_1 = arith.constant 0 : i32
    return %c0_i32, %c0_i32_0 : i32, i32
  }
  func.func @transform_2(%arg0: i32) -> (i32, i32) {
    %c0_i32 = arith.constant 0 : i32
    %c0_i32_0 = arith.constant 0 : i32
    %c0_i32_1 = arith.constant 0 : i32
    return %c0_i32, %c0_i32_0 : i32, i32
  }
  func.func @transform_3(%arg0: i32) -> (i32, i32) {
    %c0_i32 = arith.constant 0 : i32
    %c0_i32_0 = arith.constant 0 : i32
    %c0_i32_1 = arith.constant 0 : i32
    return %c0_i32, %c0_i32_0 : i32, i32
  }
  func.func @transform_4(%arg0: i32) -> (i32, i32) {
    %c0_i32 = arith.constant 0 : i32
    %c0_i32_0 = arith.constant 0 : i32
    %c0_i32_1 = arith.constant 0 : i32
    return %c0_i32, %c0_i32_0 : i32, i32
  }
  func.func @transform_5(%arg0: i32) -> (i32, i32) {
    %c0_i32 = arith.constant 0 : i32
    %c0_i32_0 = arith.constant 0 : i32
    %c0_i32_1 = arith.constant 0 : i32
    return %c0_i32, %c0_i32_0 : i32, i32
  }
  func.func @transform_6(%arg0: i32) -> (i32, i32) {
    %c0_i32 = arith.constant 0 : i32
    %c0_i32_0 = arith.constant 0 : i32
    %c0_i32_1 = arith.constant 0 : i32
    return %c0_i32, %c0_i32_0 : i32, i32
  }
  func.func @transform_7(%arg0: i32) -> (i32, i32) {
    %c0_i32 = arith.constant 0 : i32
    %c0_i32_0 = arith.constant 0 : i32
    %c0_i32_1 = arith.constant 0 : i32
    return %c0_i32, %c0_i32_0 : i32, i32
  }
  func.func @transform_8(%arg0: i32) -> (i32, i32) {
    %c0_i32 = arith.constant 0 : i32
    %c0_i32_0 = arith.constant 0 : i32
    %c0_i32_1 = arith.constant 0 : i32
    return %c0_i32, %c0_i32_0 : i32, i32
  }
  func.func @transform_9(%arg0: i32) -> (i32, i32) {
    %c0_i32 = arith.constant 0 : i32
    %c0_i32_0 = arith.constant 0 : i32
    %c0_i32_1 = arith.constant 0 : i32
    return %c0_i32, %c0_i32_0 : i32, i32
  }
  func.func @transform_10(%arg0: i32) -> (i32, i32) {
    %c0_i32 = arith.constant 0 : i32
    %c0_i32_0 = arith.constant 0 : i32
    %c0_i32_1 = arith.constant 0 : i32
    return %c0_i32, %c0_i32_0 : i32, i32
  }
  func.func @transform_11(%arg0: i32) -> (i32, i32) {
    %c0_i32 = arith.constant 0 : i32
    %c0_i32_0 = arith.constant 0 : i32
    %c0_i32_1 = arith.constant 0 : i32
    return %c0_i32, %c0_i32_0 : i32, i32
  }
  func.func @transform_12(%arg0: i32) -> (i32, i32) {
    %c0_i32 = arith.constant 0 : i32
    %c0_i32_0 = arith.constant 0 : i32
    %c0_i32_1 = arith.constant 0 : i32
    return %c0_i32, %c0_i32_0 : i32, i32
  }
  func.func @transform_13(%arg0: i32) -> (i32, i32, i32) {
    %c0_i32 = arith.constant 0 : i32
    %c0_i32_0 = arith.constant 0 : i32
    %c0_i32_1 = arith.constant 0 : i32
    return %arg0, %c0_i32, %c0_i32_0 : i32, i32, i32
  }
}

</mosaic_0001>

<bundles_post_ra>
// kernel: tpu_custom_call.1
= control target key start
LH: loop header
LB: loop body
LE: loop exit
PB: predicated region body
PF: predicated region fallthrough
CT: control target
= control target key end

     0   :  { %s3385_s0 = inlined_call_operand.hbm [shape: f32[2,64,128], index: 0, kind: input, shape index: {}]   ;;  %s3386_s1 = inlined_call_operand.vmem [shape: f32[1,128], index: 1, kind: input, shape index: {}]   ;;  %s3387_s2 = inlined_call_operand.vmem [shape: f32[1,128], index: 2, kind: input, shape index: {}]   ;;  %s3388_s3 = inlined_call_operand.hbm [shape: bf16[128,128], index: 3, kind: input, shape index: {}]   ;;  %s3389_s4 = inlined_call_operand.vmem [shape: f32[1,128], index: 4, kind: input, shape index: {}]   ;;  %s3390_s5 = inlined_call_operand.vmem [shape: f32[1,128], index: 5, kind: input, shape index: {}]   ;;  %s3391_s6 = inlined_call_operand.vmem [shape: f32[1,128], index: 6, kind: input, shape index: {}]   ;;  %s3392_s7 = inlined_call_operand.hbm [shape: bf16[640,128], index: 7, kind: input, shape index: {}]   ;;  %s3393_s8 = inlined_call_operand.vmem [shape: f32[1,128], index: 8, kind: input, shape index: {}]   ;;  %s3394_s9 = inlined_call_operand.vmem [shape: f32[1,128], index: 9, kind: input, shape index: {}]   ;;  %s3395_s10 = inlined_call_operand.vmem [shape: f32[1,128], index: 10, kind: input, shape index: {}]   ;;  %s3396_s11 = inlined_call_operand.hbm [shape: bf16[128,128], index: 11, kind: input, shape index: {}]   ;;  %s3397_s12 = inlined_call_operand.vmem [shape: f32[1,128], index: 12, kind: input, shape index: {}]   ;;  %s3398_s13 = inlined_call_operand.hbm [shape: f32[2,64,128], index: 13, kind: output, shape index: {}]  }
   0x1   :  { %3405 = sst [smem:[#allocation18_spill]] %s3393_s8 }
   0x2   :  { %3406 = sst [smem:[#allocation19_spill]] %s3394_s9 }
   0x3   :  { %3407 = sst [smem:[#allocation20_spill]] %s3395_s10 }
   0x4   :  { %3408 = sst [smem:[#allocation21_spill]] %s3397_s12 }
   0x5   :  { %3409 = sst [smem:[#allocation22_spill]] %s3398_s13 }
   0x6   :  { %18 = vsyncpa [#allocation4], 0 }
   0x7   :  { %20 = vsyncpa [#allocation4 + $0x1], 0 }
   0x8   :  { %21 = vsyncpa [#allocation7], 0 }
   0x9   :  { %22 = vsyncpa [#allocation10], 0 }
   0xa   :  { %23 = vsyncpa [#allocation5], 0 }
   0xb   :  { %25 = vsyncpa [#allocation5 + $0x1], 0  ;;  %s2872_s25 = smov 0   ;;  %s2874_s26 = smov 0  }
   0xc   :  { %s2876_s27 = smov 0   ;;  %s2878_s28 = smov 0  }
   0xd LB: > { %3410 = sst [smem:[#allocation16_spill]] %s2776_s25  ;;  %s2893_s29 = sadd.s32 4294967295, %s2788_s28   ;;  %s2788_s28 = sphi %s2878_s28, %s3438_s28   ;;  %s2784_s27 = sphi %s2876_s27, %s3437_s27   ;;  %s2780_s26 = sphi %s2874_s26, %s3436_s26   ;;  %s2776_s25 = sphi %s2872_s25, %s3435_s25  }
   0xe   : > { %s2065_s30 = sadd.s32 4294967294, %s2788_s28   ;;  %p51_p0 = scmp.ne.s32.totalorder %s2780_s26, %s2776_s25 }
   0xf   : > { %p3402_p1 = scmp.eq.s32.totalorder %s2893_s29, 0  ;;  %p333_p3 = scmp.eq.s32.totalorder %s2065_s30, 1 }
  0x10   : > { %p2066_p5 = scmp.ge.s32.totalorder %s2788_s28, 1  ;;  %p340_p7 = scmp.lt.s32.totalorder %s2788_s28, 3 }
  0x11   : > { %p2902_p4 = por %p3402_p1, %p51_p0  ;;  %p2907_p6 = por %p333_p3, %p51_p0 }
  0x12   : > { %p2912_p8 = pnand %p2066_p5, %p340_p7  ;;  %s2790_s17 = smov [#allocation6]  }
  0x13   : > { %s3411_s14 = scalar_select %p2902_p4, 1, 0 }
  0x14   : > { %s3412_s15 = scalar_select %p2907_p6, 1, 0 }
  0x15   : > { %s3414_s16 = scalar_select %p2912_p8, 1, 0 }
  0x16   : > { %3413 = sst [smem:[#allocation17_spill]] %s3412_s15  ;;  %s358_s18 = sshll.u32 %s2790_s17, 4  ;;  %s2916_s18 = int_to_ptr.vmem [resolvable:$true] %s358_s18 }
  0x17   : > { %p2372_p9 = pneg %p2912_p8  ;;  %s2791_s20 = smov [#allocation8]  }
  0x18   : > { %s380_s21 = sshll.u32 %s2791_s20, 4  ;;  %s2792_s22 = smov [#allocation9]   ;;  %s2927_s21 = int_to_ptr.vmem [resolvable:$true] %s380_s21 }
  0x19   : > { %p2923_p11 = pnand %p2372_p9, %p3402_p1  ;;  %s2929_s23 = sshll.u32 %s2792_s22, 4  ;;  %s403_s23 = int_to_ptr.vmem [resolvable:$true] %s2929_s23 }
  0x1a   : > { %s2600_s17 = scalar_lea.hbm %s3388_s3, 1024 }
  0x1b   : > { %p2601_p12 = scmp.ne.s32.totalorder %s3388_s3, %s2600_s17  ;;  %p2939_p13 = pneg %p2923_p11 }
  0x1c   : > { %p2607_p5 = scmp.lt.u32.totalorder %s2600_s17, %s3388_s3 }
  0x1d   : > { %p2603_p0 = pnand %p2939_p13, %p2601_p12 }
  0x1f   : > { %p2604_p3 = pneg %p2603_p0 }
  0x21   : > { %p2609_p7 = pnand %p2607_p5, %p2604_p3 }
  0x23   : > { %2612 = shalt.err (!%p2609_p7)
}
  0x24   : > { %s2613_s25 = scalar_lea.vmem %s2916_s18, 1024  ;;  %p2621_p2 = scmp.lt.s32.totalorder %s2916_s18, %s2916_s18 }
  0x25   : > { %p2614_p9 = scmp.ne.s32.totalorder %s2916_s18, %s2613_s25  ;;  %p2622_p6 = scmp.lt.s32.totalorder %s2613_s25, %s2613_s25 }
  0x27   : > { %p2616_p10 = pnand %p2614_p9, %p2939_p13  ;;  %p2623_p12 = por %p2622_p6, %p2621_p2 }
  0x29   : > { %p2617_p1 = pneg %p2616_p10 }
  0x2b   : > { %p2624_p0 = pnand %p2623_p12, %p2617_p1 }
  0x2d   : > { %2627 = shalt.err (!%p2624_p0)
}
  0x2e   : > { %s2793_s15 = smov 64   ;;  %s2794_s24 = smov 4  }
  0x2f   : > { %2375 = dma.hbm_to_vmem [thread:$0]  (!%p2923_p11), %s3388_s3, 1024, %s2916_s18, [#allocation7], %s2793_s15, %s2793_s15, %s2794_s24  }
  0x30   : > { %s2628_s25 = scalar_lea.hbm %s3392_s7, 5120 }
  0x31   : > { %p2629_p1 = scmp.ne.s32.totalorder %s3392_s7, %s2628_s25  ;;  %p2635_p10 = scmp.lt.u32.totalorder %s2628_s25, %s3392_s7 }
  0x33   : > { %p2631_p2 = pnand %p2629_p1, %p2939_p13 }
  0x35   : > { %p2632_p6 = pneg %p2631_p2 }
  0x37   : > { %p2637_p3 = pnand %p2635_p10, %p2632_p6 }
  0x39   : > { %2640 = shalt.err (!%p2637_p3)
}
  0x3a   : > { %s2641_s18 = scalar_lea.vmem %s2927_s21, 5120  ;;  %p2649_p12 = scmp.lt.s32.totalorder %s2927_s21, %s2927_s21 }
  0x3b   : > { %p2642_p5 = scmp.ne.s32.totalorder %s2927_s21, %s2641_s18  ;;  %p2650_p0 = scmp.lt.s32.totalorder %s2641_s18, %s2641_s18 }
  0x3d   : > { %p2644_p7 = pnand %p2642_p5, %p2939_p13  ;;  %p2651_p1 = por %p2650_p0, %p2649_p12 }
  0x3f   : > { %p2645_p9 = pneg %p2644_p7 }
  0x41   : > { %p2652_p2 = pnand %p2651_p1, %p2645_p9 }
  0x43   : > { %2655 = shalt.err (!%p2652_p2)
}
  0x44   : > { %2378 = dma.hbm_to_vmem [thread:$0]  (!%p2923_p11), %s3392_s7, 5120, %s2927_s21, [#allocation7], %s2793_s15, %s2793_s15, %s2794_s24  }
  0x45   : > { %s2656_s30 = scalar_lea.hbm %s3396_s11, 1024 }
  0x46   : > { %p2657_p6 = scmp.ne.s32.totalorder %s3396_s11, %s2656_s30  ;;  %p2663_p5 = scmp.lt.u32.totalorder %s2656_s30, %s3396_s11 }
  0x48   : > { %p2659_p10 = pnand %p2657_p6, %p2939_p13 }
  0x4a   : > { %p2660_p3 = pneg %p2659_p10 }
  0x4c   : > { %p2665_p7 = pnand %p2663_p5, %p2660_p3 }
  0x4e   : > { %2668 = shalt.err (!%p2665_p7)
}
  0x4f   : > { %s2669_s18 = scalar_lea.vmem %s403_s23, 1024  ;;  %p2677_p1 = scmp.lt.s32.totalorder %s403_s23, %s403_s23 }
  0x50   : > { %p2670_p9 = scmp.ne.s32.totalorder %s403_s23, %s2669_s18  ;;  %p2678_p2 = scmp.lt.s32.totalorder %s2669_s18, %s2669_s18 }
  0x52   : > { %p2672_p12 = pnand %p2670_p9, %p2939_p13  ;;  %p2679_p4 = por %p2678_p2, %p2677_p1 }
  0x54   : > { %p2673_p0 = pneg %p2672_p12 }
  0x56   : > { %p2680_p8 = pnand %p2679_p4, %p2673_p0 }
  0x58   : > { %2683 = shalt.err (!%p2680_p8)
}
  0x59   : > { %2381 = dma.hbm_to_vmem [thread:$0]  (!%p2923_p11), %s3396_s11, 1024, %s403_s23, [#allocation10], %s2793_s15, %s2793_s15, %s2794_s24  }
  0x5a   : > { %s3012_s13 = sadd.s32 1, %s2788_s28   ;;  %s38_s9 = sadd.s32 1, %s2784_s27 }
  0x5b   : > { %s35_s19 = ssub.s32 %s2788_s28, %s3012_s13  ;;  %p45_p8 = scmp.ne.s32.totalorder %s2784_s27, %s2780_s26 }
  0x5c   : > { %p36_p4 = scmp.eq.s32.totalorder %s35_s19, 0  ;;  %p46_p13 = scmp.eq.s32.totalorder %s2788_s28, 0 }
  0x5d   : > { %p2393_p6 = scmp.lt.s32.totalorder %s2788_s28, 2  ;;  %p3417_p3 = scmp.eq.s32.totalorder %s2893_s29, 1 }
  0x5e   : > { %s3022_s10 = scalar_select %p36_p4, %s2784_s27, %s38_s9  }
  0x5f   : > { %p47_p10 = por %p46_p13, %p45_p8  ;;  %p3026_p5 = por %p3417_p3, %p45_p8 }
  0x60   : > { %s419_s30 = sand.u32 1, %s2784_s27   ;;  %s2150_s17 = sshll.u32 %s2788_s28, 10 }
  0x61   : > { %s2071_s23 = sshll.u32 %s419_s30, 6  ;;  %s3035_s20 = scalar_lea.hbm %s3385_s0, %s2150_s17 }
  0x62   : > { %s423_s22 = scalar_lea.vmem [#allocation3], %s2071_s23  ;;  %p3037_p11 = pnand %p2393_p6, %p47_p10 }
  0x63   : > { %s430_s25 = sshll.u32 %s423_s22, 4  ;;  %s3043_s21 = scalar_lea.sflag [#allocation4], %s419_s30  ;;  %s3041_s25 = int_to_ptr.vmem [resolvable:$true] %s430_s25 }
  0x64   : > { %s2684_s8 = scalar_lea.hbm %s3035_s20, 1024  ;;  %p2686_p9 = pneg %p3037_p11 }
  0x65   : > { %p2685_p7 = scmp.ne.s32.totalorder %s3035_s20, %s2684_s8  ;;  %s2689_s17 = scalar_lea.hbm %s3385_s0, 2048 }
  0x66   : > { %p2690_p1 = scmp.lt.u32.totalorder %s3035_s20, %s3385_s0  ;;  %p2691_p2 = scmp.lt.u32.totalorder %s2689_s17, %s2684_s8 }
  0x67   : > { %p2687_p12 = pnand %p2686_p9, %p2685_p7  ;;  %p2693_p8 = scmp.lt.u32.totalorder %s2684_s8, %s3035_s20 }
  0x68   : > { %p2692_p4 = por %p2691_p2, %p2690_p1 }
  0x69   : > { %p2688_p0 = pneg %p2687_p12 }
  0x6a   : > { %p2694_p13 = por %p2693_p8, %p2692_p4 }
  0x6c   : > { %p2695_p6 = pnand %p2694_p13, %p2688_p0 }
  0x6e   : > { %2698 = shalt.err (!%p2695_p6)
}
  0x6f   : > { %s2699_s30 = scalar_lea.vmem %s3041_s25, 1024  ;;  %s2795_s24 = smov [#allocation3]  }
  0x70   : > { %p2700_p10 = scmp.ne.s32.totalorder %s3041_s25, %s2699_s30  ;;  %s2704_s22 = sshll.u32 %s2795_s24, 4  ;;  %s2705_s22 = int_to_ptr.vmem [resolvable:$false] %s2704_s22 }
  0x71   : > { %s2706_s19 = scalar_lea.vmem %s2705_s22, 2048  ;;  %p2707_p12 = scmp.lt.s32.totalorder %s3041_s25, %s2705_s22 }
  0x72   : > { %p2702_p3 = pnand %p2700_p10, %p2686_p9  ;;  %p2708_p1 = scmp.lt.s32.totalorder %s2706_s19, %s2699_s30 }
  0x74   : > { %p2703_p7 = pneg %p2702_p3  ;;  %p2709_p2 = por %p2708_p1, %p2707_p12 }
  0x76   : > { %p2710_p4 = pnand %p2709_p2, %p2703_p7 }
  0x78   : > { %2713 = shalt.err (!%p2710_p4)
}
  0x79   : > { %s2796_s8 = smov 128   ;;  %s2797_s9 = smov 8  }
  0x7a   : > { %2385 = dma.hbm_to_vmem [thread:$0]  (!%p3037_p11), %s3035_s20, 1024, %s3041_s25, %s3043_s21, %s2796_s8, %s2796_s8, %s2797_s9  }
  0x7b   : > { %p3420_p9 = scmp.ne.s32.totalorder %s3414_s16, 0 }
  0x7c   : > { %s3074_s17 = sand.u32 (!%p3420_p9), 1, %s2780_s26   ;;  %p3421_p0 = scmp.ne.s32.totalorder (!%p3420_p9), %s3411_s14, 0 }
  0x7d   : > { %442 = sbr.rel (%p3420_p9) target bundleno = 1862 (0x746), region = 72  ;;  %s2075_s23 = sshll.u32 (!%p3420_p9), %s3074_s17, 6 }
  0x7e   : > { %s445_s15 = scalar_lea.sflag (!%p3420_p9), [#allocation4], %s3074_s17  ;;  %s3080_s30 = scalar_lea.vmem (!%p3420_p9), [#allocation3], %s2075_s23 }
  0x84   : > { %2759 = dma.done.wait (%p3421_p0), %s445_s15, 1024  }
  0x85   : > { %2761 = vsyncadd (%p3421_p0), %s445_s15, 4294966272  ;;  %p3422_p11 = scmp.eq.s32.totalorder %s2893_s29, 0 }
  0x87   : > { %2763 = dma.done.wait (%p3422_p11), [#allocation7], 6144   ;;  %p3423_p8 = pmov %p3422_p11 }
  0x89   : > { %2765 = vsyncadd (%p3423_p8), [#allocation7], 4294961152  ;;  %p3424_p13 = pmov %p3423_p8 }
  0x8a   : > { %p3425_p6 = pmov %p3423_p8 }
  0x8b   : > { %2767 = dma.done.wait (%p3424_p13), [#allocation10], 1024  }
  0x8c   : > { %2769 = vsyncadd (%p3425_p6), [#allocation10], 4294966272  ;;  %v504_v0 = vld [vmem:[%s3080_s30] sm:$0xff]  ;;  %v506_v1 = vld [vmem:[%s3080_s30 + $0x10] sm:$0xff]  ;;  %vm999_vm0 = vcmask 1046528   ;;  %vm1134_vm1 = vcmask 1041408  }
  0x8d   : > { %514 = vadd.xlane.f32.xlu0 %v504_v0  ;;  %518 = vadd.xlane.f32.xlu1 %v506_v1  ;;  %v505_v2 = vld [vmem:[%s3080_s30 + $0x8] sm:$0xff]  ;;  %v507_v3 = vld [vmem:[%s3080_s30 + $0x18] sm:$0xff]  ;;  %v508_v4 = vld [vmem:[%s3080_s30 + $0x20] sm:$0xff]  ;;  %vm1023_vm2 = vcmask 1044480   ;;  %vm1010_vm3 = vcmask 1045504   ;;  %vm1035_vm4 = vcmask 1043456  }
  0x8e   : > { %v509_v5 = vld [vmem:[%s3080_s30 + $0x28] sm:$0xff]  ;;  %v510_v6 = vld [vmem:[%s3080_s30 + $0x30] sm:$0xff]  ;;  %v511_v7 = vld [vmem:[%s3080_s30 + $0x38] sm:$0xff]  ;;  %s3426_s14 = sld [smem:[#allocation18_spill]]  ;;  %s3427_s25 = sld [smem:[#allocation19_spill]] }
  0x8f   : > { %v2440_v40 = vld [vmem:[#allocation6] sm:$0xff]   ;;  %v2441_v41 = vld [vmem:[#allocation6 + $0x8] sm:$0xff]   ;;  %v2442_v42 = vld [vmem:[#allocation6 + $0x10] sm:$0xff]   ;;  %s3428_s24 = sld [smem:[#allocation20_spill]]  ;;  %s3429_s8 = sld [smem:[#allocation21_spill]] }
  0x90   : > { %2268 = vmatprep.subr.bf16.mxu0 %v2440_v40  ;;  %v2443_v43 = vld [vmem:[#allocation6 + $0x18] sm:$0xff]   ;;  %v2444_v44 = vld [vmem:[#allocation6 + $0x20] sm:$0xff]   ;;  %v2445_v45 = vld [vmem:[#allocation6 + $0x28] sm:$0xff]   ;;  %s3318_s9 = scalar_lea.vmem [#allocation11], %s2075_s23  ;;  %s2151_s15 = sshll.u32 %s2893_s29, 10 }
  0x91   : > { %516 = vadd.xlane.f32.xlu0 %v505_v2  ;;  %520 = vadd.xlane.f32.xlu1 %v507_v3  ;;  %v2446_v46 = vld [vmem:[#allocation6 + $0x30] sm:$0xff]   ;;  %v2447_v47 = vld [vmem:[#allocation6 + $0x38] sm:$0xff]   ;;  %s1963_s23 = sshll.u32 %s3318_s9, 4  ;;  %s3430_s16 = sld [smem:[#allocation22_spill]]  ;;  %s3329_s23 = int_to_ptr.vmem [resolvable:$true] %s1963_s23 }
  0x92   : > { %2269 = vmatpush3.bf16.msra.mxu0 %v2440_v40  ;;  %s2714_s18 = scalar_lea.vmem %s3329_s23, 1024  ;;  %s2799_s21 = smov [#allocation11]  }
  0x93   : > { %2270 = vmatprep.subr.bf16.mxu0 %v2441_v41  ;;  %p2715_p10 = scmp.ne.s32.totalorder %s3329_s23, %s2714_s18 }
  0x95   : > { %522 = vadd.xlane.f32.xlu0 %v508_v4  ;;  %524 = vadd.xlane.f32.xlu1 %v509_v5  ;;  %p2716_p3 = pnand %p2715_p10, %p3026_p5 }
  0x96   : > { %2271 = vmatpush3.bf16.msra.mxu0 %v2441_v41 }
  0x97   : > { %2272 = vmatprep.subr.bf16.mxu0 %v2442_v42  ;;  %s3337_s20 = scalar_lea.hbm %s3430_s16, %s2151_s15  ;;  %p2717_p7 = pneg %p2716_p3 }
  0x99   : > { %526 = vadd.xlane.f32.xlu0 %v510_v6  ;;  %528 = vadd.xlane.f32.xlu1 %v511_v7 }
  0x9a   : > { %2273 = vmatpush3.bf16.msra.mxu0 %v2442_v42 }
  0x9b   : > { %2274 = vmatprep.subr.bf16.mxu0 %v2443_v43 }
  0x9e   : > { %2275 = vmatpush3.bf16.msra.mxu0 %v2443_v43 }
  0x9f   : > { %2276 = vmatprep.subr.bf16.mxu0 %v2444_v44 }
  0xa2   : > { %2277 = vmatpush3.bf16.msra.mxu0 %v2444_v44 }
  0xa3   : > { %2278 = vmatprep.subr.bf16.mxu0 %v2445_v45 }
  0xa6   : > { %2279 = vmatpush3.bf16.msra.mxu0 %v2445_v45 }
  0xa7   : > { %2280 = vmatprep.subr.bf16.mxu0 %v2446_v46 }
  0xaa   : > { %2281 = vmatpush3.bf16.msra.mxu0 %v2446_v46 }
  0xab   : > { %2282 = vmatprep.subr.bf16.mxu0 %v2447_v47 }
  0xae   : > { %2283 = vmatpush3.bf16.msra.mxu0 %v2447_v47 }
 0x11a   : > { %v515_v8 = vpop.xlane.xlu0 %514  ;;  %v519_v9 = vpop.xlane.xlu1 %518 }
 0x11b   : > { %v531_v10 = vmul.f32 0.0078125, %v515_v8  ;;  %v533_v11 = vmul.f32 0.0078125, %v519_v9 }
 0x11d   : > { %v3102_v12 = vsub.f32 %v504_v0, %v531_v10  ;;  %v3104_v13 = vsub.f32 %v506_v1, %v533_v11  ;;  %v2081_v10 = vld [vmem:[%s3387_s2] ss:$0 sm:$0xff] }
 0x11e   : > { %v517_v14 = vpop.xlane.xlu0 %516  ;;  %v521_v15 = vpop.xlane.xlu1 %520 }
 0x11f   : > { %v532_v16 = vmul.f32 0.0078125, %v517_v14  ;;  %v547_v17 = vmul.f32 %v3102_v12, %v3102_v12  ;;  %v534_v18 = vmul.f32 0.0078125, %v521_v15  ;;  %v549_v21 = vmul.f32 %v3104_v13, %v3104_v13 }
 0x121   : > { %v3108_v19 = vsub.f32 %v505_v2, %v532_v16  ;;  %555 = vadd.xlane.f32.xlu0 %v547_v17  ;;  %v3110_v20 = vsub.f32 %v507_v3, %v534_v18 }
 0x122   : > { %v523_v22 = vpop.xlane.xlu0 %522  ;;  %v525_v23 = vpop.xlane.xlu1 %524 }
 0x123   : > { %v535_v24 = vmul.f32 0.0078125, %v523_v22  ;;  %v548_v25 = vmul.f32 %v3108_v19, %v3108_v19  ;;  %v536_v26 = vmul.f32 0.0078125, %v525_v23  ;;  %v550_v29 = vmul.f32 %v3110_v20, %v3110_v20 }
 0x125   : > { %v3116_v27 = vsub.f32 %v508_v4, %v535_v24  ;;  %559 = vadd.xlane.f32.xlu0 %v549_v21  ;;  %557 = vadd.xlane.f32.xlu1 %v548_v25  ;;  %v3118_v28 = vsub.f32 %v509_v5, %v536_v26 }
 0x126   : > { %v527_v30 = vpop.xlane.xlu0 %526  ;;  %v529_v31 = vpop.xlane.xlu1 %528 }
 0x127   : > { %v537_v32 = vmul.f32 0.0078125, %v527_v30  ;;  %v551_v33 = vmul.f32 %v3116_v27, %v3116_v27  ;;  %v538_v34 = vmul.f32 0.0078125, %v529_v31  ;;  %v552_v37 = vmul.f32 %v3118_v28, %v3118_v28 }
 0x129   : > { %v3124_v35 = vsub.f32 %v510_v6, %v537_v32  ;;  %561 = vadd.xlane.f32.xlu1 %v550_v29  ;;  %563 = vadd.xlane.f32.xlu0 %v551_v33  ;;  %v3126_v36 = vsub.f32 %v511_v7, %v538_v34  ;;  %v2080_v6 = vld [vmem:[%s3386_s1] ss:$0 sm:$0xff] }
 0x12b   : > { %v553_v38 = vmul.f32 %v3124_v35, %v3124_v35  ;;  %v554_v39 = vmul.f32 %v3126_v36, %v3126_v36 }
 0x12d   : > { %565 = vadd.xlane.f32.xlu1 %v552_v37  ;;  %567 = vadd.xlane.f32.xlu0 %v553_v38 }
 0x131   : > { %569 = vadd.xlane.f32.xlu1 %v554_v39 }
 0x1ae   : > { %v556_v48 = vpop.xlane.xlu0 %555 }
 0x1af   : > { %v571_v49 = vmul.f32 0.0078125, %v556_v48 }
 0x1b1   : > { %v579_v50 = vadd.f32 1e-05, %v571_v49 }
 0x1b2   : > { %v558_v51 = vpop.xlane.xlu1 %557  ;;  %v560_v52 = vpop.xlane.xlu0 %559 }
 0x1b3   : > { %2496 = vrsqrt.f32 %v579_v50  ;;  %v572_v53 = vmul.f32 0.0078125, %v558_v51  ;;  %v573_v54 = vmul.f32 0.0078125, %v560_v52 }
 0x1b5   : > { %v580_v55 = vadd.f32 1e-05, %v572_v53  ;;  %v581_v56 = vadd.f32 1e-05, %v573_v54 }
 0x1b6   : > { %v562_v57 = vpop.xlane.xlu1 %561  ;;  %v564_v58 = vpop.xlane.xlu0 %563 }
 0x1b7   : > { %2498 = vrsqrt.f32 %v580_v55  ;;  %v574_v59 = vmul.f32 0.0078125, %v562_v57  ;;  %v575_v60 = vmul.f32 0.0078125, %v564_v58 }
 0x1b8   : > { %2500 = vrsqrt.f32 %v581_v56 }
 0x1b9   : > { %v582_v61 = vadd.f32 1e-05, %v574_v59  ;;  %v583_v62 = vadd.f32 1e-05, %v575_v60 }
 0x1ba   : > { %v566_v63 = vpop.xlane.xlu1 %565  ;;  %v568_v0 = vpop.xlane.xlu0 %567 }
 0x1bb   : > { %2502 = vrsqrt.f32 %v582_v61  ;;  %v576_v1 = vmul.f32 0.0078125, %v566_v63  ;;  %v577_v2 = vmul.f32 0.0078125, %v568_v0 }
 0x1bc   : > { %2504 = vrsqrt.f32 %v583_v62 }
 0x1bd   : > { %v2497_v3 = vpop.eup %2496  ;;  %v584_v4 = vadd.f32 1e-05, %v576_v1  ;;  %v585_v5 = vadd.f32 1e-05, %v577_v2 }
 0x1be   : > { %v570_v7 = vpop.xlane.xlu1 %569  ;;  %v595_v8 = vmul.f32 %v2497_v3, %v3102_v12 }
 0x1bf   : > { %2506 = vrsqrt.f32 %v584_v4  ;;  %v578_v9 = vmul.f32 0.0078125, %v570_v7 }
 0x1c0   : > { %2508 = vrsqrt.f32 %v585_v5  ;;  %v609_v11 = vmul.f32 %v2080_v6, %v595_v8 }
 0x1c1   : > { %v2499_v14 = vpop.eup %2498  ;;  %v586_v15 = vadd.f32 1e-05, %v578_v9 }
 0x1c2   : > { %v2501_v16 = vpop.eup %2500  ;;  %v596_v17 = vmul.f32 %v2499_v14, %v3108_v19  ;;  %v623_v18 = vadd.f32 %v2081_v10, %v609_v11 }
 0x1c3   : > { %v597_v21 = vmul.f32 %v2501_v16, %v3104_v13  ;;  %2510 = vrsqrt.f32 %v586_v15 }
 0x1c4   : > { %v610_v22 = vmul.f32 %v2080_v6, %v596_v17  ;;  %v639_v23 = vmul.f32 0.70710677, %v623_v18  ;;  %v631_v55 = vmul.f32 0.5, %v623_v18 }
 0x1c5   : > { %v2503_v12 = vpop.eup %2502  ;;  %v611_v24 = vmul.f32 %v2080_v6, %v597_v21 }
 0x1c6   : > { %v2505_v25 = vpop.eup %2504  ;;  %v598_v26 = vmul.f32 %v2503_v12, %v3110_v20  ;;  %v624_v29 = vadd.f32 %v2081_v10, %v610_v22  ;;  %2512 = verf.f32 %v639_v23 }
 0x1c7   : > { %v599_v30 = vmul.f32 %v2505_v25, %v3116_v27  ;;  %v625_v31 = vadd.f32 %v2081_v10, %v611_v24  ;;  %v2082_v25 = vld [vmem:[%s3389_s4] ss:$0 sm:$0xff] }
 0x1c8   : > { %v640_v32 = vmul.f32 0.70710677, %v624_v29  ;;  %v612_v33 = vmul.f32 %v2080_v6, %v598_v26  ;;  %v632_v56 = vmul.f32 0.5, %v624_v29 }
 0x1c9   : > { %v2507_v34 = vpop.eup %2506  ;;  %v641_v19 = vmul.f32 0.70710677, %v625_v31  ;;  %v613_v37 = vmul.f32 %v2080_v6, %v599_v30  ;;  %v633_v63 = vmul.f32 0.5, %v625_v31 }
 0x1ca   : > { %v2509_v38 = vpop.eup %2508  ;;  %v600_v13 = vmul.f32 %v2507_v34, %v3118_v28  ;;  %2514 = verf.f32 %v640_v32  ;;  %v626_v39 = vadd.f32 %v2081_v10, %v612_v33 }
 0x1cb   : > { %v601_v40 = vmul.f32 %v2509_v38, %v3124_v35  ;;  %2516 = verf.f32 %v641_v19  ;;  %v627_v41 = vadd.f32 %v2081_v10, %v613_v37 }
 0x1cc   : > { %v642_v20 = vmul.f32 0.70710677, %v626_v39  ;;  %v614_v42 = vmul.f32 %v2080_v6, %v600_v13  ;;  %v634_v0 = vmul.f32 0.5, %v626_v39 }
 0x1cd   : > { %v2511_v43 = vpop.eup %2510  ;;  %v643_v44 = vmul.f32 0.70710677, %v627_v41  ;;  %v615_v27 = vmul.f32 %v2080_v6, %v601_v40  ;;  %v635_v8 = vmul.f32 0.5, %v627_v41 }
 0x1ce   : > { %v602_v45 = vmul.f32 %v2511_v43, %v3126_v36  ;;  %2518 = verf.f32 %v642_v20  ;;  %v628_v46 = vadd.f32 %v2081_v10, %v614_v42 }
 0x1cf   : > { %2520 = verf.f32 %v643_v44  ;;  %v629_v47 = vadd.f32 %v2081_v10, %v615_v27 }
 0x1d0   : > { %v2513_v48 = vpop.eup %2512  ;;  %v644_v49 = vmul.f32 0.70710677, %v628_v46  ;;  %v616_v28 = vmul.f32 %v2080_v6, %v602_v45  ;;  %v636_v9 = vmul.f32 0.5, %v628_v46 }
 0x1d1   : > { %v645_v50 = vmul.f32 0.70710677, %v629_v47  ;;  %v655_v35 = vadd.f32 1.0, %v2513_v48  ;;  %v637_v18 = vmul.f32 0.5, %v629_v47 }
 0x1d2   : > { %2522 = verf.f32 %v644_v49  ;;  %v630_v51 = vadd.f32 %v2081_v10, %v616_v28 }
 0x1d3   : > { %2524 = verf.f32 %v645_v50  ;;  %v663_v36 = vmul.f32 %v655_v35, %v631_v55 }
 0x1d4   : > { %v2515_v52 = vpop.eup %2514  ;;  %v646_v53 = vmul.f32 0.70710677, %v630_v51  ;;  %v638_v21 = vmul.f32 0.5, %v630_v51 }
 0x1d5   : > { %v2517_v54 = vpop.eup %2516  ;;  %v656_v57 = vadd.f32 1.0, %v2515_v52 }
 0x1d6   : > { %2526 = verf.f32 %v646_v53  ;;  %v657_v59 = vadd.f32 1.0, %v2517_v54 }
 0x1d7   : > { %v664_v58 = vmul.f32 %v656_v57, %v632_v56 }
 0x1d8   : > { %v2519_v60 = vpop.eup %2518  ;;  %v665_v2 = vmul.f32 %v657_v59, %v633_v63 }
 0x1d9   : > { %v2521_v61 = vpop.eup %2520  ;;  %v671_v62 = vpack.c.bf16 %v664_v58, %v663_v36  ;;  %v658_v1 = vadd.f32 1.0, %v2519_v60 }
 0x1da   : > { %v659_v4 = vadd.f32 1.0, %v2521_v61 }
 0x1db   : > { %2284 = vmatprep.mubr.bf16.mxu0 %v671_v62  ;;  %v666_v3 = vmul.f32 %v658_v1, %v634_v0 }
 0x1dc   : > { %v2523_v5 = vpop.eup %2522  ;;  %v667_v11 = vmul.f32 %v659_v4, %v635_v8  ;;  %v2449_v8 = vld [vmem:[#allocation8] sm:$0xff]  }
 0x1dd   : > { %v2525_v6 = vpop.eup %2524  ;;  %v672_v7 = vpack.c.bf16 %v666_v3, %v665_v2  ;;  %v660_v10 = vadd.f32 1.0, %v2523_v5 }
 0x1de   : > { %v661_v15 = vadd.f32 1.0, %v2525_v6 }
 0x1df   : > { %2285 = vmatmul.mubr.bf16.vlgmr.msra.gmra.mrb[0].mxu0 %v672_v7  ;;  %v668_v14 = vmul.f32 %v660_v10, %v636_v9  ;;  %v2448_v7 = vld [vmem:[#allocation8 + $0x40] sm:$0xff]   ;;  %v2452_v10 = vld [vmem:[#allocation8 + $0x48] sm:$0xff]  }
 0x1e0   : > { %v2527_v16 = vpop.eup %2526  ;;  %v669_v23 = vmul.f32 %v661_v15, %v637_v18  ;;  %2164 = vmatprep.subr.bf16.mxu1 %v2448_v7  ;;  %v2450_v9 = vld [vmem:[#allocation8 + $0xc0] sm:$0xff]   ;;  %v2454_v15 = vld [vmem:[#allocation8 + $0xc8] sm:$0xff]   ;;  %v2457_v18 = vld [vmem:[#allocation8 + $0x10] sm:$0xff]  }
 0x1e1   : > { %v673_v17 = vpack.c.bf16 %v668_v14, %v667_v11  ;;  %v662_v22 = vadd.f32 1.0, %v2527_v16  ;;  %2165 = vmatpush3.bf16.msra.mxu1 %v2449_v8  ;;  %v2451_v11 = vld [vmem:[#allocation8 + $0x80] sm:$0xff]   ;;  %v2453_v14 = vld [vmem:[#allocation8 + $0x8] sm:$0xff]   ;;  %2204 = vmatprep.subr.bf16.mxu0 %v2450_v9  ;;  %v2456_v16 = vld [vmem:[#allocation8 + $0x50] sm:$0xff]  }
 0x1e2   : > { %2166 = vmatprep.subr.bf16.mxu1 %v2452_v10  ;;  %2205 = vmatpush3.bf16.msra.mxu0 %v2451_v11  ;;  %v2091_v7 = vld [vmem:[%s3390_s5] ss:$0 sm:$0xff] }
 0x1e3   : > { %2288 = vmatprep.mubr.bf16.mxu0 %v673_v17  ;;  %v670_v12 = vmul.f32 %v662_v22, %v638_v21  ;;  %v2455_v17 = vld [vmem:[#allocation8 + $0x88] sm:$0xff]   ;;  %2206 = vmatprep.subr.bf16.mxu0 %v2454_v15  ;;  %v2458_v21 = vld [vmem:[#allocation8 + $0xd0] sm:$0xff]   ;;  %v2460_v22 = vld [vmem:[#allocation8 + $0x58] sm:$0xff]  }
 0x1e5   : > { %v674_v24 = vpack.c.bf16 %v670_v12, %v669_v23  ;;  %2167 = vmatpush3.bf16.msra.mxu1 %v2453_v14  ;;  %v2459_v23 = vld [vmem:[#allocation8 + $0x90] sm:$0xff]   ;;  %v2461_v12 = vld [vmem:[#allocation8 + $0x18] sm:$0xff]  }
 0x1e6   : > { %2168 = vmatprep.subr.bf16.mxu1 %v2456_v16  ;;  %2207 = vmatpush3.bf16.msra.mxu0 %v2455_v17  ;;  %v2092_v14 = vld [vmem:[%s3391_s6] ss:$0 sm:$0xff] }
 0x1e7   : > { %2289 = vmatmul.mubr.bf16.gmra.mrb[4].mxu0 %v674_v24  ;;  %2208 = vmatprep.subr.bf16.mxu0 %v2458_v21  ;;  %v2798_v24 = vmov 0  }
 0x1e8   : > { %969 = vst [vmem:[#allocation2] sm:$0xff] %v2798_v24  ;;  %970 = vst [vmem:[#allocation2 + $0x28] sm:$0xff] %v2798_v24 }
 0x1e9   : > { %2169 = vmatpush3.bf16.msra.mxu1 %v2457_v18 }
 0x1ea   : > { %2170 = vmatprep.subr.bf16.mxu1 %v2460_v22  ;;  %2209 = vmatpush3.bf16.msra.mxu0 %v2459_v23 }
 0x1ed   : > { %2171 = vmatpush3.bf16.msra.mxu1 %v2461_v12 }
 0x2b2   : > { %v2286_v26 = vpop.f32.mrb[0].mxu0 }
 0x2b3   : > { %v780_v29 = vpop.f32.mrb[1].mxu0  ;;  %v789_v34 = vadd.f32 %v2286_v26, %v2082_v25  ;;  %v2464_v26 = vld [vmem:[#allocation8 + $0x60] sm:$0xff]  }
 0x2b4   : > { %v781_v30 = vadd.f32 %v2082_v25, %v780_v29  ;;  %v2287_v31 = vpop.f32.mrb[2].mxu0  ;;  %v2463_v29 = vld [vmem:[#allocation8 + $0x98] sm:$0xff]   ;;  %2172 = vmatprep.subr.bf16.mxu1 %v2464_v26 }
 0x2b5   : > { %v783_v32 = vpop.f32.mrb[3].mxu0  ;;  %v792_v19 = vadd.f32 %v2287_v31, %v2082_v25  ;;  %v2466_v31 = vld [vmem:[#allocation8 + $0xe0] sm:$0xff]  }
 0x2b6   : > { %v784_v33 = vadd.f32 %v2082_v25, %v783_v32  ;;  %813 = vadd.xlane.f32.xlu0 %v781_v30  ;;  %v2468_v32 = vld [vmem:[#allocation8 + $0x68] sm:$0xff]  }
 0x2b8   : > { %815 = vadd.xlane.f32.xlu1 %v784_v33 }
 0x2ba   : > { %817 = vadd.xlane.f32.xlu0 %v789_v34  ;;  %v2290_v37 = vpop.f32.mrb[4].mxu0 }
 0x2bb   : > { %v796_v38 = vpop.f32.mrb[5].mxu0  ;;  %v805_v20 = vadd.f32 %v2290_v37, %v2082_v25  ;;  %v2472_v37 = vld [vmem:[#allocation8 + $0x70] sm:$0xff]  }
 0x2bc   : > { %v797_v13 = vadd.f32 %v2082_v25, %v796_v38  ;;  %819 = vadd.xlane.f32.xlu1 %v792_v19  ;;  %v2291_v39 = vpop.f32.mrb[6].mxu0  ;;  %v2471_v38 = vld [vmem:[#allocation8 + $0xa8] sm:$0xff]  }
 0x2bd   : > { %v799_v40 = vpop.f32.mrb[7].mxu0  ;;  %v808_v42 = vadd.f32 %v2291_v39, %v2082_v25  ;;  %v2474_v39 = vld [vmem:[#allocation8 + $0xf0] sm:$0xff]  }
 0x2be   : > { %v800_v41 = vadd.f32 %v2082_v25, %v799_v40  ;;  %821 = vadd.xlane.f32.xlu0 %v797_v13  ;;  %v2462_v25 = vld [vmem:[#allocation8 + $0xd8] sm:$0xff]  }
 0x2bf   : > { %2210 = vmatprep.subr.bf16.mxu0 %v2462_v25  ;;  %v2476_v40 = vld [vmem:[#allocation8 + $0x78] sm:$0xff]  }
 0x2c0   : > { %823 = vadd.xlane.f32.xlu1 %v800_v41  ;;  %2211 = vmatpush3.bf16.msra.mxu0 %v2463_v29 }
 0x2c1   : > { %2212 = vmatprep.subr.bf16.mxu0 %v2466_v31 }
 0x2c2   : > { %825 = vadd.xlane.f32.xlu0 %v805_v20 }
 0x2c4   : > { %827 = vadd.xlane.f32.xlu1 %v808_v42 }
 0x343   : > { %v814_v43 = vpop.xlane.xlu0 %813 }
 0x344   : > { %v829_v44 = vmul.f32 0.0078125, %v814_v43  ;;  %v3183_v43 = vld [vmem:[#allocation8 + $0x100] sm:$0xff]  }
 0x345   : > { %v816_v27 = vpop.xlane.xlu1 %815 }
 0x346   : > { %v3151_v45 = vsub.f32 %v781_v30, %v829_v44  ;;  %v830_v46 = vmul.f32 0.0078125, %v816_v27  ;;  %v2465_v30 = vld [vmem:[#allocation8 + $0x20] sm:$0xff]   ;;  %v2479_v44 = vld [vmem:[#allocation8 + $0xb8] sm:$0xff]  }
 0x347   : > { %v818_v47 = vpop.xlane.xlu0 %817  ;;  %2173 = vmatpush3.bf16.msra.mxu1 %v2465_v30 }
 0x348   : > { %v3153_v48 = vsub.f32 %v784_v33, %v830_v46  ;;  %v831_v49 = vmul.f32 0.0078125, %v818_v47  ;;  %v845_v28 = vmul.f32 %v3151_v45, %v3151_v45  ;;  %v2467_v33 = vld [vmem:[#allocation8 + $0xa0] sm:$0xff]   ;;  %2174 = vmatprep.subr.bf16.mxu1 %v2468_v32 }
 0x349   : > { %v820_v50 = vpop.xlane.xlu1 %819  ;;  %2213 = vmatpush3.bf16.msra.mxu0 %v2467_v33 }
 0x34a   : > { %v3157_v51 = vsub.f32 %v789_v34, %v831_v49  ;;  %v832_v35 = vmul.f32 0.0078125, %v820_v50  ;;  %853 = vadd.xlane.f32.xlu0 %v845_v28  ;;  %v846_v52 = vmul.f32 %v3153_v48, %v3153_v48  ;;  %v2469_v34 = vld [vmem:[#allocation8 + $0x28] sm:$0xff]  }
 0x34b   : > { %v822_v53 = vpop.xlane.xlu0 %821  ;;  %2175 = vmatpush3.bf16.msra.mxu1 %v2469_v34 }
 0x34c   : > { %v3161_v54 = vsub.f32 %v792_v19, %v832_v35  ;;  %v833_v55 = vmul.f32 0.0078125, %v822_v53  ;;  %855 = vadd.xlane.f32.xlu1 %v846_v52  ;;  %v847_v56 = vmul.f32 %v3157_v51, %v3157_v51  ;;  %v2470_v19 = vld [vmem:[#allocation8 + $0xe8] sm:$0xff]   ;;  %2176 = vmatprep.subr.bf16.mxu1 %v2472_v37 }
 0x34d   : > { %v824_v57 = vpop.xlane.xlu1 %823  ;;  %2214 = vmatprep.subr.bf16.mxu0 %v2470_v19 }
 0x34e   : > { %v3165_v36 = vsub.f32 %v797_v13, %v833_v55  ;;  %v834_v58 = vmul.f32 0.0078125, %v824_v57  ;;  %857 = vadd.xlane.f32.xlu0 %v847_v56  ;;  %v848_v59 = vmul.f32 %v3161_v54, %v3161_v54  ;;  %v2473_v13 = vld [vmem:[#allocation8 + $0x30] sm:$0xff]   ;;  %2215 = vmatpush3.bf16.msra.mxu0 %v2471_v38 }
 0x34f   : > { %v826_v60 = vpop.xlane.xlu0 %825  ;;  %2177 = vmatpush3.bf16.msra.mxu1 %v2473_v13  ;;  %2216 = vmatprep.subr.bf16.mxu0 %v2474_v39 }
 0x350   : > { %v3169_v61 = vsub.f32 %v800_v41, %v834_v58  ;;  %v835_v62 = vmul.f32 0.0078125, %v826_v60  ;;  %859 = vadd.xlane.f32.xlu1 %v848_v59  ;;  %v849_v63 = vmul.f32 %v3165_v36, %v3165_v36  ;;  %v2475_v41 = vld [vmem:[#allocation8 + $0xb0] sm:$0xff]   ;;  %2178 = vmatprep.subr.bf16.mxu1 %v2476_v40 }
 0x351   : > { %v828_v0 = vpop.xlane.xlu1 %827 }
 0x352   : > { %v3173_v1 = vsub.f32 %v805_v20, %v835_v62  ;;  %v836_v2 = vmul.f32 0.0078125, %v828_v0  ;;  %861 = vadd.xlane.f32.xlu0 %v849_v63  ;;  %v850_v3 = vmul.f32 %v3169_v61, %v3169_v61  ;;  %v2477_v20 = vld [vmem:[#allocation8 + $0x38] sm:$0xff]   ;;  %2217 = vmatpush3.bf16.msra.mxu0 %v2475_v41 }
 0x353   : > { %2179 = vmatpush3.bf16.msra.mxu1 %v2477_v20 }
 0x354   : > { %v3177_v4 = vsub.f32 %v808_v42, %v836_v2  ;;  %863 = vadd.xlane.f32.xlu1 %v850_v3  ;;  %v851_v5 = vmul.f32 %v3173_v1, %v3173_v1  ;;  %v2478_v42 = vld [vmem:[#allocation8 + $0xf8] sm:$0xff]   ;;  %2292 = vmatprep.subr.bf16.mxu1 %v3183_v43 }
 0x355   : > { %2218 = vmatprep.subr.bf16.mxu0 %v2478_v42 }
 0x356   : > { %865 = vadd.xlane.f32.xlu0 %v851_v5  ;;  %v852_v6 = vmul.f32 %v3177_v4, %v3177_v4  ;;  %2219 = vmatpush3.bf16.msra.mxu0 %v2479_v44 }
 0x358   : > { %867 = vadd.xlane.f32.xlu1 %v852_v6 }
 0x3d7   : > { %v854_v27 = vpop.xlane.xlu0 %853 }
 0x3d8   : > { %v869_v46 = vmul.f32 0.0078125, %v854_v27 }
 0x3d9   : > { %v856_v47 = vpop.xlane.xlu1 %855 }
 0x3da   : > { %v877_v49 = vadd.f32 1e-05, %v869_v46  ;;  %v870_v28 = vmul.f32 0.0078125, %v856_v47 }
 0x3db   : > { %v858_v50 = vpop.xlane.xlu0 %857 }
 0x3dc   : > { %2528 = vrsqrt.f32 %v877_v49  ;;  %v878_v35 = vadd.f32 1e-05, %v870_v28  ;;  %v871_v52 = vmul.f32 0.0078125, %v858_v50 }
 0x3dd   : > { %v860_v53 = vpop.xlane.xlu1 %859 }
 0x3de   : > { %2530 = vrsqrt.f32 %v878_v35  ;;  %v879_v55 = vadd.f32 1e-05, %v871_v52  ;;  %v872_v56 = vmul.f32 0.0078125, %v860_v53 }
 0x3df   : > { %v862_v57 = vpop.xlane.xlu0 %861 }
 0x3e0   : > { %2532 = vrsqrt.f32 %v879_v55  ;;  %v880_v58 = vadd.f32 1e-05, %v872_v56  ;;  %v873_v59 = vmul.f32 0.0078125, %v862_v57 }
 0x3e1   : > { %v864_v60 = vpop.xlane.xlu1 %863 }
 0x3e2   : > { %2534 = vrsqrt.f32 %v880_v58  ;;  %v881_v62 = vadd.f32 1e-05, %v873_v59  ;;  %v874_v63 = vmul.f32 0.0078125, %v864_v60  ;;  %v984_v59 = vld [vmem:[#allocation2] sm:$0x80] }
 0x3e3   : > { %v866_v0 = vpop.xlane.xlu0 %865 }
 0x3e4   : > { %2536 = vrsqrt.f32 %v881_v62  ;;  %v882_v2 = vadd.f32 1e-05, %v874_v63  ;;  %v875_v3 = vmul.f32 0.0078125, %v866_v0 }
 0x3e5   : > { %v868_v5 = vpop.xlane.xlu1 %867 }
 0x3e6   : > { %v2529_v6 = vpop.eup %2528  ;;  %2538 = vrsqrt.f32 %v882_v2  ;;  %v883_v8 = vadd.f32 1e-05, %v875_v3  ;;  %v876_v9 = vmul.f32 0.0078125, %v868_v5  ;;  %v979_v3 = vld [vmem:[#allocation2] sm:$0xc0] }
 0x3e7   : > { %v893_v10 = vmul.f32 %v2529_v6, %v3151_v45  ;;  %v1000_v6 = vrot.slane %v984_v59, 1 }
 0x3e8   : > { %v2531_v11 = vpop.eup %2530  ;;  %2540 = vrsqrt.f32 %v883_v8  ;;  %v884_v15 = vadd.f32 1e-05, %v876_v9 }
 0x3e9   : > { %v907_v16 = vmul.f32 %v2091_v7, %v893_v10  ;;  %v894_v17 = vmul.f32 %v2531_v11, %v3153_v48 }
 0x3ea   : > { %v2533_v18 = vpop.eup %2532  ;;  %2542 = vrsqrt.f32 %v884_v15 }
 0x3eb   : > { %v921_v21 = vadd.f32 %v2092_v14, %v907_v16  ;;  %v908_v22 = vmul.f32 %v2091_v7, %v894_v17  ;;  %v895_v23 = vmul.f32 %v2533_v18, %v3157_v51  ;;  %v1135_v17 = vrot.slane %v979_v3, 6 }
 0x3ec   : > { %v2535_v12 = vpop.eup %2534 }
 0x3ed   : > { %v937_v24 = vmul.f32 0.70710677, %v921_v21  ;;  %v922_v25 = vadd.f32 %v2092_v14, %v908_v22  ;;  %v909_v45 = vmul.f32 %v2091_v7, %v895_v23  ;;  %v896_v29 = vmul.f32 %v2535_v12, %v3161_v54 }
 0x3ee   : > { %v2537_v26 = vpop.eup %2536  ;;  %v929_v52 = vmul.f32 0.5, %v921_v21 }
 0x3ef   : > { %2544 = verf.f32 %v937_v24  ;;  %v938_v30 = vmul.f32 0.70710677, %v922_v25  ;;  %v923_v31 = vadd.f32 %v2092_v14, %v909_v45  ;;  %v910_v33 = vmul.f32 %v2091_v7, %v896_v29 }
 0x3f0   : > { %v2539_v32 = vpop.eup %2538  ;;  %v897_v48 = vmul.f32 %v2537_v26, %v3165_v36  ;;  %v930_v53 = vmul.f32 0.5, %v922_v25 }
 0x3f1   : > { %2546 = verf.f32 %v938_v30  ;;  %v939_v34 = vmul.f32 0.70710677, %v923_v31  ;;  %v898_v19 = vmul.f32 %v2539_v32, %v3169_v61  ;;  %v924_v51 = vadd.f32 %v2092_v14, %v910_v33 }
 0x3f2   : > { %v2541_v37 = vpop.eup %2540  ;;  %v911_v38 = vmul.f32 %v2091_v7, %v897_v48  ;;  %v931_v63 = vmul.f32 0.5, %v923_v31 }
 0x3f3   : > { %2548 = verf.f32 %v939_v34  ;;  %v912_v13 = vmul.f32 %v2091_v7, %v898_v19  ;;  %v899_v39 = vmul.f32 %v2541_v37, %v3173_v1  ;;  %v940_v54 = vmul.f32 0.70710677, %v924_v51 }
 0x3f4   : > { %v2543_v40 = vpop.eup %2542  ;;  %v925_v41 = vadd.f32 %v2092_v14, %v911_v38  ;;  %v932_v0 = vmul.f32 0.5, %v924_v51 }
 0x3f5   : > { %v926_v20 = vadd.f32 %v2092_v14, %v912_v13  ;;  %v913_v42 = vmul.f32 %v2091_v7, %v899_v39  ;;  %v900_v44 = vmul.f32 %v2543_v40, %v3177_v4  ;;  %2550 = verf.f32 %v940_v54 }
 0x3f6   : > { %v941_v36 = vmul.f32 0.70710677, %v925_v41 }
 0x3f7   : > { %v942_v27 = vmul.f32 0.70710677, %v926_v20  ;;  %v927_v46 = vadd.f32 %v2092_v14, %v913_v42  ;;  %v914_v47 = vmul.f32 %v2091_v7, %v900_v44  ;;  %v934_v15 = vmul.f32 0.5, %v926_v20 }
 0x3f8   : > { %2552 = verf.f32 %v941_v36 }
 0x3f9   : > { %v2545_v61 = vpop.eup %2544  ;;  %2554 = verf.f32 %v942_v27  ;;  %v943_v49 = vmul.f32 0.70710677, %v927_v46  ;;  %v928_v28 = vadd.f32 %v2092_v14, %v914_v47  ;;  %v933_v14 = vmul.f32 0.5, %v925_v41 }
 0x3fa   : > { %v953_v50 = vadd.f32 1.0, %v2545_v61  ;;  %v935_v32 = vmul.f32 0.5, %v927_v46  ;;  %v2481_v61 = vld [vmem:[#allocation8 + $0x108] sm:$0xff]  }
 0x3fb   : > { %v2547_v35 = vpop.eup %2546  ;;  %2556 = verf.f32 %v943_v49  ;;  %v944_v1 = vmul.f32 0.70710677, %v928_v28  ;;  %v936_v33 = vmul.f32 0.5, %v928_v28 }
 0x3fc   : > { %v954_v55 = vadd.f32 1.0, %v2547_v35  ;;  %v961_v4 = vmul.f32 %v953_v50, %v929_v52 }
 0x3fd   : > { %v2549_v56 = vpop.eup %2548  ;;  %2558 = verf.f32 %v944_v1 }
 0x3fe   : > { %v962_v57 = vmul.f32 %v954_v55, %v930_v53  ;;  %v955_v58 = vadd.f32 1.0, %v2549_v56 }
 0x3ff   : > { %v2551_v60 = vpop.eup %2550 }
 0x400   : > { %v3200_v62 = vpack.c.bf16 %v962_v57, %v961_v4  ;;  %v956_v2 = vadd.f32 1.0, %v2551_v60  ;;  %v963_v9 = vmul.f32 %v955_v58, %v931_v63  ;;  %v2482_v58 = vld [vmem:[#allocation8 + $0x110] sm:$0xff]  }
 0x402   : > { %v2553_v5 = vpop.eup %2552  ;;  %975 = vst [vmem:[#allocation2 + $0x8] sm:$0xff] %v3200_v62  ;;  %v1001_v7 = vrot.slane %v3200_v62, 1  ;;  %v964_v10 = vmul.f32 %v956_v2, %v932_v0  ;;  %v1136_v29 = vrot.slane %v3200_v62, 6  ;;  %v1011_v30 = vrot.slane %v3200_v62, 2  ;;  %v2483_v2 = vld [vmem:[#allocation8 + $0x118] sm:$0xff]  }
 0x403   : > { %v2555_v8 = vpop.eup %2554  ;;  %v957_v11 = vadd.f32 1.0, %v2553_v5 }
 0x404   : > { %v958_v16 = vadd.f32 1.0, %v2555_v8  ;;  %v3204_v21 = vpack.c.bf16 %v964_v10, %v963_v9  ;;  %v1002_v24 = vsel %vm999_vm0, %v1000_v6, %v1001_v7  ;;  %v1137_v41 = vsel %vm1134_vm1, %v1135_v17, %v1136_v29 }
 0x405   : > { %v2557_v18 = vpop.eup %2556  ;;  %v965_v22 = vmul.f32 %v957_v11, %v933_v14  ;;  %v1138_v19 = vrot.slane %v1002_v24, 6  ;;  %v1141_v1 = vrot.slane %v1011_v30, 6  ;;  %v2484_v14 = vld [vmem:[#allocation8 + $0x120] sm:$0xff]  }
 0x406   : > { %v966_v23 = vmul.f32 %v958_v16, %v934_v15  ;;  %v959_v12 = vadd.f32 1.0, %v2557_v18  ;;  %v1003_v45 = vrot.slane %v3204_v21, 1  ;;  %v1012_v26 = vrot.slane %v3204_v21, 2 }
 0x407   : > { %v2559_v25 = vpop.eup %2558  ;;  %v1025_v51 = vrot.slane %v3204_v21, 3  ;;  %v1150_v60 = vrot.slane %v3204_v21, 6 }
 0x408   : > { %v3211_v31 = vpack.c.bf16 %v966_v23, %v965_v22  ;;  %v960_v48 = vadd.f32 1.0, %v2559_v25  ;;  %v1004_v34 = vsel %vm999_vm0, %v1001_v7, %v1003_v45  ;;  %v1013_v38 = vsel %vm1010_vm3, %v1011_v30, %v1012_v26 }
 0x409   : > { %v987_v37 = vld [vmem:[#allocation2 + $0x8] sm:$0xfe]  ;;  %v967_v13 = vmul.f32 %v959_v12, %v935_v32  ;;  %v1139_v40 = vrot.slane %v1004_v34, 6  ;;  %v1142_v20 = vrot.slane %v1013_v38, 6  ;;  %v1151_v3 = vsel %vm1134_vm1, %v1136_v29, %v1150_v60 }
 0x40a   : > { %v968_v39 = vmul.f32 %v960_v48, %v936_v33  ;;  %v1024_v54 = vrot.slane %v987_v37, 3  ;;  %v1005_v42 = vrot.slane %v3211_v31, 1  ;;  %v1027_v44 = vrot.slane %v3211_v31, 3  ;;  %v992_v15 = vld [vmem:[#allocation2 + $0x8] sm:$0xfc]  ;;  %v2486_v37 = vld [vmem:[#allocation8 + $0x130] sm:$0xff]  }
 0x40b   : > { %v1140_v27 = vsel %vm1134_vm1, %v1138_v19, %v1139_v40  ;;  %v1014_v35 = vrot.slane %v3211_v31, 2  ;;  %v1143_v4 = vsel %vm1134_vm1, %v1141_v1, %v1142_v20  ;;  %v1160_v18 = vrot.slane %v3211_v31, 6 }
 0x40c   : > { %v3219_v36 = vpack.c.bf16 %v968_v39, %v967_v13  ;;  %v1026_v46 = vsel %vm1023_vm2, %v1024_v54, %v1025_v51  ;;  %v1144_v47 = vrot.slane %v1024_v54, 6  ;;  %1472 = vmatprep.mubr.bf16.mxu1 %v1140_v27  ;;  %v1006_v28 = vsel %vm999_vm0, %v1003_v45, %v1005_v42  ;;  %v993_v27 = vld [vmem:[#allocation2 + $0x28] sm:$0x3] }
 0x40d   : > { %v1145_v49 = vrot.slane %v1026_v46, 6  ;;  %v1028_v50 = vsel %vm1023_vm2, %v1025_v51, %v1027_v44  ;;  %1473 = vmatmul.mubr.bf16.vlgmr.msra.gmra.mrb[0].mxu1 %v1137_v41  ;;  %v1152_v52 = vrot.slane %v1006_v28, 6  ;;  %v1015_v62 = vsel %vm1010_vm3, %v1012_v26, %v1014_v35  ;;  %v2485_v26 = vld [vmem:[#allocation8 + $0x128] sm:$0xff]   ;;  %v2487_v41 = vld [vmem:[#allocation8 + $0x138] sm:$0xff]  }
 0x40e   : > { %978 = vst [vmem:[#allocation2 + $0x20] sm:$0xff] %v3219_v36  ;;  %v1156_v53 = vrot.slane %v1028_v50, 6  ;;  %v1029_v55 = vrot.slane %v3219_v36, 3  ;;  %2293 = vmatpush3.bf16.msra.mxu1 %v3183_v43  ;;  %v991_v43 = vld [vmem:[#allocation2 + $0x28] sm:$0x1]  ;;  %v1154_v0 = vrot.slane %v1015_v62, 6  ;;  %v1161_v29 = vsel %vm1134_vm1, %v1150_v60, %v1160_v18 }
 0x40f   : > { %v1146_v56 = vsel %vm1134_vm1, %v1144_v47, %v1145_v49  ;;  %v1153_v57 = vsel %vm1134_vm1, %v1139_v40, %v1152_v52  ;;  %2294 = vmatprep.subr.bf16.mxu1 %v2481_v61  ;;  %v1016_v7 = vrot.slane %v3219_v36, 2  ;;  %v1031_v9 = vrot.slane %v991_v43, 3 }
 0x410   : > { %1537 = vmatprep.mubr.bf16.mxu0 %v1146_v56  ;;  %1480 = vmatprep.mubr.bf16.mxu1 %v1153_v57  ;;  %v1157_v59 = vsel %vm1134_vm1, %v1145_v49, %v1156_v53  ;;  %v1030_v63 = vsel %vm1023_vm2, %v1027_v44, %v1029_v55  ;;  %v1155_v10 = vsel %vm1134_vm1, %v1142_v20, %v1154_v0  ;;  %v1036_v25 = vrot.slane %v992_v15, 4 }
 0x411   : > { %1538 = vmatmul.mubr.bf16.vlgmr.msra.gmra.mrb[8].mxu0 %v1143_v4  ;;  %v1166_v6 = vrot.slane %v1030_v63, 6  ;;  %v1017_v22 = vsel %vm1010_vm3, %v1014_v35, %v1016_v7  ;;  %v1032_v12 = vsel %vm1023_vm2, %v1029_v55, %v1031_v9  ;;  %v1037_v32 = vrot.slane %v3204_v21, 4  ;;  %v2093_v55 = vld [vmem:[%s3426_s14] ss:$0 sm:$0xff] }
 0x412   : > { %1545 = vmatprep.mubr.bf16.mxu0 %v1157_v59  ;;  %2295 = vmatpush3.bf16.msra.mxu1 %v2481_v61  ;;  %v1164_v45 = vrot.slane %v1017_v22, 6  ;;  %v1176_v30 = vrot.slane %v1032_v12, 6  ;;  %v1039_v13 = vrot.slane %v3211_v31, 4  ;;  %v1147_v21 = vrot.slane %v1036_v25, 6 }
 0x413   : > { %2296 = vmatprep.subr.bf16.mxu1 %v2482_v58  ;;  %v1167_v17 = vsel %vm1134_vm1, %v1156_v53, %v1166_v6  ;;  %v1038_v34 = vsel %vm1035_vm4, %v1036_v25, %v1037_v32  ;;  %v1041_v40 = vrot.slane %v3219_v36, 4  ;;  %v1174_v54 = vrot.slane %v1016_v7, 6 }
 0x414   : > { %v1165_v19 = vsel %vm1134_vm1, %v1154_v0, %v1164_v45  ;;  %v1177_v51 = vsel %vm1134_vm1, %v1166_v6, %v1176_v30  ;;  %v1148_v39 = vrot.slane %v1038_v34, 6  ;;  %v1040_v44 = vsel %vm1035_vm4, %v1037_v32, %v1039_v13 }
 0x415   : > { %v985_v5 = vld [vmem:[#allocation2 + $0x20] sm:$0x7f]  ;;  %1481 = vmatmul.mubr.bf16.gmra.mrb[4].mxu1 %v1151_v3  ;;  %v1042_v31 = vsel %vm1035_vm4, %v1039_v13, %v1041_v40  ;;  %v1175_v46 = vsel %vm1134_vm1, %v1164_v45, %v1174_v54  ;;  %v1158_v36 = vrot.slane %v1040_v44, 6  ;;  %v1043_v61 = vrot.slane %v993_v27, 4 }
 0x416   : > { %v1007_v8 = vrot.slane %v985_v5, 1  ;;  %2297 = vmatpush3.bf16.msra.mxu1 %v2482_v58  ;;  %v983_v48 = vld [vmem:[#allocation2 + $0x20] sm:$0x3f]  ;;  %v1168_v47 = vrot.slane %v1042_v31, 6 }
 0x417   : > { %2298 = vmatprep.subr.bf16.mxu1 %v2483_v2  ;;  %v1170_v38 = vrot.slane %v983_v48, 6  ;;  %v1159_v49 = vsel %vm1134_vm1, %v1148_v39, %v1158_v36  ;;  %v1044_v50 = vsel %vm1035_vm4, %v1041_v40, %v1043_v61 }
 0x418   : > { %v1008_v11 = vsel %vm999_vm0, %v1005_v42, %v1007_v8  ;;  %v1172_v23 = vrot.slane %v1007_v8, 6  ;;  %v1149_v42 = vsel %vm1134_vm1, %v1147_v21, %v1148_v39  ;;  %v1169_v28 = vsel %vm1134_vm1, %v1158_v36, %v1168_v47 }
 0x419   : > { %1546 = vmatmul.mubr.bf16.gmra.mrb[12].mxu0 %v1155_v10  ;;  %v1162_v16 = vrot.slane %v1008_v11, 6  ;;  %v1171_v20 = vsel %vm1134_vm1, %v1160_v18, %v1170_v38  ;;  %v1178_v35 = vrot.slane %v1044_v50, 6 }
 0x41a   : > { %1553 = vmatprep.mubr.bf16.mxu0 %v1167_v17  ;;  %2299 = vmatpush3.bf16.msra.mxu1 %v2483_v2 }
 0x41b   : > { %v1163_v24 = vsel %vm1134_vm1, %v1152_v52, %v1162_v16  ;;  %2300 = vmatprep.subr.bf16.mxu1 %v2484_v14  ;;  %v1173_v33 = vsel %vm1134_vm1, %v1162_v16, %v1172_v23  ;;  %v1179_v1 = vsel %vm1134_vm1, %v1168_v47, %v1178_v35 }
 0x41c   : > { %1488 = vmatprep.mubr.bf16.mxu1 %v1163_v24 }
 0x41d   : > { %1489 = vmatmul.mubr.bf16.gmra.mrb[8].mxu1 %v1161_v29 }
 0x41e   : > { %2301 = vmatpush3.bf16.msra.mxu1 %v2484_v14  ;;  %1496 = vmatprep.mubr.bf16.mxu1 %v1173_v33 }
 0x41f   : > { %2302 = vmatprep.subr.bf16.mxu1 %v2485_v26 }
 0x421   : > { %1554 = vmatmul.mubr.bf16.gmra.mrb[16].mxu0 %v1165_v19 }
 0x422   : > { %1561 = vmatprep.mubr.bf16.mxu0 %v1177_v51  ;;  %2303 = vmatpush3.bf16.msra.mxu1 %v2485_v26 }
 0x423   : > { %2304 = vmatprep.subr.bf16.mxu1 %v2486_v37 }
 0x425   : > { %1497 = vmatmul.mubr.bf16.gmra.mrb[12].mxu1 %v1171_v20 }
 0x426   : > { %2305 = vmatpush3.bf16.msra.mxu1 %v2486_v37  ;;  %2308 = vmatprep.mubr.bf16.mxu1 %v1149_v42 }
 0x427   : > { %2306 = vmatprep.subr.bf16.mxu1 %v2487_v41 }
 0x429   : > { %1562 = vmatmul.mubr.bf16.gmra.mrb[20].mxu0 %v1175_v46 }
 0x42a   : > { %2307 = vmatpush3.bf16.msra.mxu1 %v2487_v41 }
 0x42d   : > { %2309 = vmatmul.mubr.bf16.vlgmr.msra.gmra.mrb[16].mxu1 %v1159_v49 }
 0x42e   : > { %2312 = vmatprep.mubr.bf16.mxu1 %v1169_v28 }
 0x435   : > { %2313 = vmatmul.mubr.bf16.gmra.mrb[20].mxu1 %v1179_v1 }
 0x4e0   : > { %v2180_v52 = vpop.f32.mrb[0].mxu1 }
 0x4e1   : > { %v2181_v53 = vpop.f32.mrb[1].mxu1 }
 0x4e2   : > { %v2182_v56 = vadd.f32 %v2181_v53, %v2180_v52  ;;  %v2183_v4 = vpop.f32.mrb[2].mxu1 }
 0x4e3   : > { %v2184_v58 = vpop.f32.mrb[3].mxu1 }
 0x4e4   : > { %v2220_v57 = vpop.f32.mrb[8].mxu0  ;;  %v2185_v60 = vadd.f32 %v2184_v58, %v2183_v4  ;;  %v1475_v62 = vadd.f32 %v2182_v56, %v2093_v55 }
 0x4e5   : > { %v2221_v59 = vpop.f32.mrb[9].mxu0 }
 0x4e6   : > { %v2222_v63 = vadd.f32 %v2221_v59, %v2220_v57  ;;  %v2223_v43 = vpop.f32.mrb[10].mxu0  ;;  %v1478_v2 = vadd.f32 %v2185_v60, %v2093_v55 }
 0x4e7   : > { %v2224_v0 = vpop.f32.mrb[11].mxu0 }
 0x4e8   : > { %v2225_v3 = vadd.f32 %v2224_v0, %v2223_v43  ;;  %v1540_v5 = vadd.f32 %v2222_v63, %v1475_v62  ;;  %v2186_v6 = vpop.f32.mrb[4].mxu1 }
 0x4e9   : > { %v2187_v7 = vpop.f32.mrb[5].mxu1 }
 0x4ea   : > { %v1543_v8 = vadd.f32 %v2225_v3, %v1478_v2  ;;  %v2188_v9 = vadd.f32 %v2187_v7, %v2186_v6  ;;  %v2189_v10 = vpop.f32.mrb[6].mxu1 }
 0x4eb   : > { %v2190_v14 = vpop.f32.mrb[7].mxu1 }
 0x4ec   : > { %v2226_v11 = vpop.f32.mrb[12].mxu0  ;;  %v2191_v16 = vadd.f32 %v2190_v14, %v2189_v10  ;;  %v1483_v17 = vadd.f32 %v2188_v9, %v2093_v55 }
 0x4ed   : > { %v2227_v15 = vpop.f32.mrb[13].mxu0 }
 0x4ee   : > { %v2228_v18 = vadd.f32 %v2227_v15, %v2226_v11  ;;  %v2229_v22 = vpop.f32.mrb[14].mxu0  ;;  %v1486_v12 = vadd.f32 %v2191_v16, %v2093_v55 }
 0x4ef   : > { %v2230_v23 = vpop.f32.mrb[15].mxu0 }
 0x4f0   : > { %v2231_v24 = vadd.f32 %v2230_v23, %v2229_v22  ;;  %v1548_v25 = vadd.f32 %v2228_v18, %v1483_v17  ;;  %v2192_v45 = vpop.f32.mrb[8].mxu1 }
 0x4f1   : > { %v2193_v26 = vpop.f32.mrb[9].mxu1 }
 0x4f2   : > { %v1551_v29 = vadd.f32 %v2231_v24, %v1486_v12  ;;  %v2194_v30 = vadd.f32 %v2193_v26, %v2192_v45  ;;  %v2195_v32 = vpop.f32.mrb[10].mxu1 }
 0x4f3   : > { %v2196_v48 = vpop.f32.mrb[11].mxu1 }
 0x4f4   : > { %v2232_v33 = vpop.f32.mrb[16].mxu0  ;;  %v2197_v19 = vadd.f32 %v2196_v48, %v2195_v32  ;;  %v1491_v37 = vadd.f32 %v2194_v30, %v2093_v55 }
 0x4f5   : > { %v2233_v34 = vpop.f32.mrb[17].mxu0 }
 0x4f6   : > { %v2234_v51 = vadd.f32 %v2233_v34, %v2232_v33  ;;  %v2235_v38 = vpop.f32.mrb[18].mxu0  ;;  %v1494_v21 = vadd.f32 %v2197_v19, %v2093_v55 }
 0x4f7   : > { %v2236_v13 = vpop.f32.mrb[19].mxu0 }
 0x4f8   : > { %v2237_v39 = vadd.f32 %v2236_v13, %v2235_v38  ;;  %v1556_v40 = vadd.f32 %v2234_v51, %v1491_v37  ;;  %v2198_v54 = vpop.f32.mrb[12].mxu1 }
 0x4f9   : > { %v2199_v41 = vpop.f32.mrb[13].mxu1 }
 0x4fa   : > { %v1559_v20 = vadd.f32 %v2237_v39, %v1494_v21  ;;  %v2200_v42 = vadd.f32 %v2199_v41, %v2198_v54  ;;  %v2201_v44 = vpop.f32.mrb[14].mxu1  ;;  %v2488_v41 = vld [vmem:[#allocation9] sm:$0xff]  }
 0x4fb   : > { %v2202_v27 = vpop.f32.mrb[15].mxu1  ;;  %2316 = vmatprep.subr.bf16.mxu0 %v2488_v41  ;;  %2340 = vmatprep.subr.bf16.mxu1 %v2488_v41 }
 0x4fc   : > { %v2238_v31 = vpop.f32.mrb[20].mxu0  ;;  %v2203_v36 = vadd.f32 %v2202_v27, %v2201_v44  ;;  %v1499_v47 = vadd.f32 %v2200_v42, %v2093_v55  ;;  %2317 = vmatpush3.bf16.msra.mxu0 %v2488_v41  ;;  %2348 = vmatpush3.bf16.msra.mxu1 %v2488_v41  ;;  %v2490_v42 = vld [vmem:[#allocation9 + $0x10] sm:$0xff]   ;;  %v2491_v44 = vld [vmem:[#allocation9 + $0x18] sm:$0xff]   ;;  %v2493_v27 = vld [vmem:[#allocation9 + $0x28] sm:$0xff]  }
 0x4fd   : > { %v2239_v46 = vpop.f32.mrb[21].mxu0 }
 0x4fe   : > { %v2240_v61 = vadd.f32 %v2239_v46, %v2238_v31  ;;  %v2241_v49 = vpop.f32.mrb[22].mxu0  ;;  %v1502_v50 = vadd.f32 %v2203_v36, %v2093_v55  ;;  %v2492_v31 = vld [vmem:[#allocation9 + $0x20] sm:$0xff]   ;;  %v2494_v46 = vld [vmem:[#allocation9 + $0x30] sm:$0xff]   ;;  %v2495_v36 = vld [vmem:[#allocation9 + $0x38] sm:$0xff]  }
 0x4ff   : > { %v2242_v28 = vpop.f32.mrb[23].mxu0 }
 0x500   : > { %v2243_v35 = vadd.f32 %v2242_v28, %v2241_v49  ;;  %v1564_v1 = vadd.f32 %v2240_v61, %v1499_v47  ;;  %v2310_v52 = vpop.f32.mrb[16].mxu1 }
 0x501   : > { %v1613_v53 = vadd.f32 %v2310_v52, %v1548_v25  ;;  %v1604_v56 = vpop.f32.mrb[17].mxu1 }
 0x502   : > { %v1567_v4 = vadd.f32 %v2243_v35, %v1502_v50  ;;  %v1605_v57 = vadd.f32 %v1604_v56, %v1540_v5  ;;  %v2311_v58 = vpop.f32.mrb[18].mxu1 }
 0x503   : > { %v1616_v59 = vadd.f32 %v2311_v58, %v1551_v29  ;;  %1641 = vadd.xlane.f32.xlu0 %v1613_v53  ;;  %v1607_v60 = vpop.f32.mrb[19].mxu1 }
 0x504   : > { %v1608_v62 = vadd.f32 %v1607_v60, %v1543_v8 }
 0x505   : > { %1643 = vadd.xlane.f32.xlu1 %v1616_v59 }
 0x507   : > { %1637 = vadd.xlane.f32.xlu0 %v1605_v57 }
 0x508   : > { %v2314_v63 = vpop.f32.mrb[20].mxu1 }
 0x509   : > { %v1629_v43 = vadd.f32 %v2314_v63, %v1564_v1  ;;  %v1620_v0 = vpop.f32.mrb[21].mxu1  ;;  %1639 = vadd.xlane.f32.xlu1 %v1608_v62 }
 0x50a   : > { %v1621_v2 = vadd.f32 %v1620_v0, %v1556_v40  ;;  %v2315_v55 = vpop.f32.mrb[22].mxu1 }
 0x50b   : > { %v1632_v3 = vadd.f32 %v2315_v55, %v1567_v4  ;;  %v1623_v6 = vpop.f32.mrb[23].mxu1 }
 0x50c   : > { %v1624_v7 = vadd.f32 %v1623_v6, %v1559_v20  ;;  %1645 = vadd.xlane.f32.xlu0 %v1621_v2  ;;  %v2489_v20 = vld [vmem:[#allocation9 + $0x8] sm:$0xff]  }
 0x50d   : > { %2318 = vmatprep.subr.bf16.mxu0 %v2489_v20  ;;  %2341 = vmatprep.subr.bf16.mxu1 %v2489_v20 }
 0x50e   : > { %1647 = vadd.xlane.f32.xlu1 %v1624_v7  ;;  %2319 = vmatpush3.bf16.msra.mxu0 %v2489_v20 }
 0x50f   : > { %2349 = vmatpush3.bf16.msra.mxu1 %v2489_v20  ;;  %2320 = vmatprep.subr.bf16.mxu0 %v2490_v42 }
 0x510   : > { %1649 = vadd.xlane.f32.xlu0 %v1629_v43  ;;  %2342 = vmatprep.subr.bf16.mxu1 %v2490_v42 }
 0x512   : > { %1651 = vadd.xlane.f32.xlu1 %v1632_v3  ;;  %2321 = vmatpush3.bf16.msra.mxu0 %v2490_v42 }
 0x513   : > { %2350 = vmatpush3.bf16.msra.mxu1 %v2490_v42  ;;  %2322 = vmatprep.subr.bf16.mxu0 %v2491_v44 }
 0x514   : > { %2343 = vmatprep.subr.bf16.mxu1 %v2491_v44 }
 0x516   : > { %2323 = vmatpush3.bf16.msra.mxu0 %v2491_v44 }
 0x517   : > { %2351 = vmatpush3.bf16.msra.mxu1 %v2491_v44  ;;  %2324 = vmatprep.subr.bf16.mxu0 %v2492_v31 }
 0x518   : > { %2344 = vmatprep.subr.bf16.mxu1 %v2492_v31 }
 0x51a   : > { %2325 = vmatpush3.bf16.msra.mxu0 %v2492_v31 }
 0x51b   : > { %2352 = vmatpush3.bf16.msra.mxu1 %v2492_v31  ;;  %2326 = vmatprep.subr.bf16.mxu0 %v2493_v27 }
 0x51c   : > { %2345 = vmatprep.subr.bf16.mxu1 %v2493_v27 }
 0x51e   : > { %2327 = vmatpush3.bf16.msra.mxu0 %v2493_v27 }
 0x51f   : > { %2353 = vmatpush3.bf16.msra.mxu1 %v2493_v27  ;;  %2328 = vmatprep.subr.bf16.mxu0 %v2494_v46 }
 0x520   : > { %2346 = vmatprep.subr.bf16.mxu1 %v2494_v46 }
 0x522   : > { %2329 = vmatpush3.bf16.msra.mxu0 %v2494_v46 }
 0x523   : > { %2354 = vmatpush3.bf16.msra.mxu1 %v2494_v46  ;;  %2330 = vmatprep.subr.bf16.mxu0 %v2495_v36 }
 0x524   : > { %2347 = vmatprep.subr.bf16.mxu1 %v2495_v36 }
 0x526   : > { %2331 = vmatpush3.bf16.msra.mxu0 %v2495_v36 }
 0x527   : > { %2355 = vmatpush3.bf16.msra.mxu1 %v2495_v36 }
 0x590   : > { %v1642_v5 = vpop.xlane.xlu0 %1641 }
 0x591   : > { %v1655_v9 = vmul.f32 0.0078125, %v1642_v5 }
 0x592   : > { %v1644_v10 = vpop.xlane.xlu1 %1643 }
 0x593   : > { %v3265_v11 = vsub.f32 %v1613_v53, %v1655_v9  ;;  %v1656_v8 = vmul.f32 0.0078125, %v1644_v10 }
 0x594   : > { %v1638_v14 = vpop.xlane.xlu0 %1637 }
 0x595   : > { %v3267_v15 = vsub.f32 %v1616_v59, %v1656_v8  ;;  %v1653_v16 = vmul.f32 0.0078125, %v1638_v14  ;;  %v1671_v17 = vmul.f32 %v3265_v11, %v3265_v11  ;;  %v2135_v8 = vld [vmem:[%s3428_s24] ss:$0 sm:$0xff]  ;;  %s2718_s24 = sshll.u32 %s2799_s21, 4  ;;  %s2719_s24 = int_to_ptr.vmem [resolvable:$false] %s2718_s24 }
 0x596   : > { %v1640_v18 = vpop.xlane.xlu1 %1639  ;;  %s2720_s22 = scalar_lea.vmem %s2719_s24, 2048  ;;  %p2721_p12 = scmp.lt.s32.totalorder %s3329_s23, %s2719_s24 }
 0x597   : > { %v3271_v22 = vsub.f32 %v1605_v57, %v1653_v16  ;;  %v1654_v23 = vmul.f32 0.0078125, %v1640_v18  ;;  %1681 = vadd.xlane.f32.xlu0 %v1671_v17  ;;  %v1672_v12 = vmul.f32 %v3267_v15, %v3267_v15  ;;  %p2722_p1 = scmp.lt.s32.totalorder %s2720_s22, %s2714_s18 }
 0x599   : > { %v3275_v24 = vsub.f32 %v1608_v62, %v1654_v23  ;;  %v1646_v25 = vpop.xlane.xlu0 %1645  ;;  %1683 = vadd.xlane.f32.xlu1 %v1672_v12  ;;  %v1669_v45 = vmul.f32 %v3271_v22, %v3271_v22  ;;  %p2723_p2 = por %p2722_p1, %p2721_p12 }
 0x59a   : > { %v1657_v26 = vmul.f32 0.0078125, %v1646_v25 }
 0x59b   : > { %v1648_v29 = vpop.xlane.xlu1 %1647  ;;  %1677 = vadd.xlane.f32.xlu0 %v1669_v45  ;;  %v1670_v30 = vmul.f32 %v3275_v24, %v3275_v24  ;;  %p2724_p4 = pnand %p2723_p2, %p2717_p7 }
 0x59c   : > { %v3281_v32 = vsub.f32 %v1621_v2, %v1657_v26  ;;  %v1658_v33 = vmul.f32 0.0078125, %v1648_v29 }
 0x59d   : > { %1679 = vadd.xlane.f32.xlu1 %v1670_v30  ;;  %v1650_v48 = vpop.xlane.xlu0 %1649 }
 0x59e   : > { %v3283_v34 = vsub.f32 %v1624_v7, %v1658_v33  ;;  %v1659_v19 = vmul.f32 0.0078125, %v1650_v48  ;;  %v1673_v37 = vmul.f32 %v3281_v32, %v3281_v32 }
 0x59f   : > { %v1652_v51 = vpop.xlane.xlu1 %1651 }
 0x5a0   : > { %v3287_v38 = vsub.f32 %v1629_v43, %v1659_v19  ;;  %v1660_v13 = vmul.f32 0.0078125, %v1652_v51  ;;  %1685 = vadd.xlane.f32.xlu0 %v1673_v37  ;;  %v1674_v21 = vmul.f32 %v3283_v34, %v3283_v34 }
 0x5a2   : > { %v3291_v39 = vsub.f32 %v1632_v3, %v1660_v13  ;;  %1687 = vadd.xlane.f32.xlu1 %v1674_v21  ;;  %v1675_v40 = vmul.f32 %v3287_v38, %v3287_v38  ;;  %v2134_v3 = vld [vmem:[%s3427_s25] ss:$0 sm:$0xff]  ;;  %s1950_s25 = scalar_lea.sflag [#allocation5], %s3074_s17 }
 0x5a4   : > { %1689 = vadd.xlane.f32.xlu0 %v1675_v40  ;;  %v1676_v54 = vmul.f32 %v3291_v39, %v3291_v39 }
 0x5a6   : > { %1691 = vadd.xlane.f32.xlu1 %v1676_v54 }
 0x624   : > { %v1682_v47 = vpop.xlane.xlu0 %1681 }
 0x625   : > { %v1695_v61 = vmul.f32 0.0078125, %v1682_v47 }
 0x626   : > { %v1684_v49 = vpop.xlane.xlu1 %1683 }
 0x627   : > { %v1703_v28 = vadd.f32 1e-05, %v1695_v61  ;;  %v1696_v50 = vmul.f32 0.0078125, %v1684_v49 }
 0x628   : > { %v1678_v35 = vpop.xlane.xlu0 %1677 }
 0x629   : > { %2560 = vrsqrt.f32 %v1703_v28  ;;  %v1704_v1 = vadd.f32 1e-05, %v1696_v50  ;;  %v1693_v52 = vmul.f32 0.0078125, %v1678_v35 }
 0x62a   : > { %v1680_v53 = vpop.xlane.xlu1 %1679 }
 0x62b   : > { %2562 = vrsqrt.f32 %v1704_v1  ;;  %v1701_v56 = vadd.f32 1e-05, %v1693_v52  ;;  %v1694_v4 = vmul.f32 0.0078125, %v1680_v53 }
 0x62d   : > { %2564 = vrsqrt.f32 %v1701_v56  ;;  %v1702_v57 = vadd.f32 1e-05, %v1694_v4  ;;  %v1686_v58 = vpop.xlane.xlu0 %1685 }
 0x62e   : > { %v1697_v59 = vmul.f32 0.0078125, %v1686_v58 }
 0x62f   : > { %2566 = vrsqrt.f32 %v1702_v57  ;;  %v1688_v60 = vpop.xlane.xlu1 %1687 }
 0x630   : > { %v1705_v62 = vadd.f32 1e-05, %v1697_v59  ;;  %v1698_v63 = vmul.f32 0.0078125, %v1688_v60 }
 0x631   : > { %v1690_v43 = vpop.xlane.xlu0 %1689 }
 0x632   : > { %2568 = vrsqrt.f32 %v1705_v62  ;;  %v1706_v0 = vadd.f32 1e-05, %v1698_v63  ;;  %v1699_v2 = vmul.f32 0.0078125, %v1690_v43 }
 0x633   : > { %v2561_v55 = vpop.eup %2560  ;;  %v1692_v6 = vpop.xlane.xlu1 %1691 }
 0x634   : > { %v1719_v7 = vmul.f32 %v2561_v55, %v3265_v11  ;;  %2570 = vrsqrt.f32 %v1706_v0  ;;  %v1707_v5 = vadd.f32 1e-05, %v1699_v2  ;;  %v1700_v9 = vmul.f32 0.0078125, %v1692_v6 }
 0x635   : > { %v2563_v10 = vpop.eup %2562 }
 0x636   : > { %v1733_v14 = vmul.f32 %v2134_v3, %v1719_v7  ;;  %v1720_v16 = vmul.f32 %v2563_v10, %v3267_v15  ;;  %2572 = vrsqrt.f32 %v1707_v5  ;;  %v1708_v17 = vadd.f32 1e-05, %v1700_v9 }
 0x637   : > { %v2565_v18 = vpop.eup %2564 }
 0x638   : > { %v1747_v23 = vadd.f32 %v2135_v8, %v1733_v14  ;;  %v1734_v12 = vmul.f32 %v2134_v3, %v1720_v16  ;;  %v1717_v25 = vmul.f32 %v2565_v18, %v3271_v22  ;;  %2574 = vrsqrt.f32 %v1708_v17 }
 0x639   : > { %v2567_v11 = vpop.eup %2566 }
 0x63a   : > { %v1748_v45 = vadd.f32 %v2135_v8, %v1734_v12  ;;  %v1718_v26 = vmul.f32 %v2567_v11, %v3275_v24  ;;  %v1731_v29 = vmul.f32 %v2134_v3, %v1717_v25  ;;  %v1763_v30 = vmul.f32 0.70710677, %v1747_v23 }
 0x63b   : > { %v1755_v59 = vmul.f32 0.5, %v1747_v23 }
 0x63c   : > { %v2569_v33 = vpop.eup %2568  ;;  %v1764_v48 = vmul.f32 0.70710677, %v1748_v45  ;;  %v1732_v19 = vmul.f32 %v2134_v3, %v1718_v26  ;;  %v1745_v37 = vadd.f32 %v2135_v8, %v1731_v29  ;;  %v1756_v56 = vmul.f32 0.5, %v1748_v45  ;;  %v2136_v29 = vld [vmem:[%s3429_s8] ss:$0 sm:$0xff] }
 0x63d   : > { %v1721_v15 = vmul.f32 %v2569_v33, %v3281_v32 }
 0x63e   : > { %v2571_v51 = vpop.eup %2570  ;;  %v1746_v13 = vadd.f32 %v2135_v8, %v1732_v19  ;;  %v1761_v21 = vmul.f32 0.70710677, %v1745_v37  ;;  %2576 = verf.f32 %v1764_v48  ;;  %v1753_v4 = vmul.f32 0.5, %v1745_v37 }
 0x63f   : > { %v1722_v40 = vmul.f32 %v2571_v51, %v3283_v34  ;;  %2578 = verf.f32 %v1763_v30  ;;  %v1735_v22 = vmul.f32 %v2134_v3, %v1721_v15  ;;  %v2592_v15 = vld [vmem:[%s3080_s30 + $0x10] sm:$0xff] }
 0x640   : > { %v2573_v54 = vpop.eup %2572  ;;  %v1762_v41 = vmul.f32 0.70710677, %v1746_v13  ;;  %2580 = verf.f32 %v1761_v21  ;;  %v1754_v57 = vmul.f32 0.5, %v1746_v13 }
 0x641   : > { %v1723_v24 = vmul.f32 %v2573_v54, %v3287_v38  ;;  %v1736_v20 = vmul.f32 %v2134_v3, %v1722_v40  ;;  %v1749_v42 = vadd.f32 %v2135_v8, %v1735_v22  ;;  %v2593_v40 = vld [vmem:[%s3080_s30] sm:$0xff] }
 0x642   : > { %v2575_v44 = vpop.eup %2574  ;;  %2582 = verf.f32 %v1762_v41  ;;  %v2594_v41 = vld [vmem:[%s3080_s30 + $0x18] sm:$0xff] }
 0x643   : > { %v1737_v31 = vmul.f32 %v2134_v3, %v1723_v24  ;;  %v1724_v32 = vmul.f32 %v2575_v44, %v3291_v39  ;;  %v1750_v27 = vadd.f32 %v2135_v8, %v1736_v20  ;;  %v1765_v46 = vmul.f32 0.70710677, %v1749_v42  ;;  %v2595_v20 = vld [vmem:[%s3080_s30 + $0x8] sm:$0xff] }
 0x644   : > { %v1757_v7 = vmul.f32 0.5, %v1749_v42 }
 0x645   : > { %v1751_v36 = vadd.f32 %v2135_v8, %v1737_v31  ;;  %v1738_v47 = vmul.f32 %v2134_v3, %v1724_v32  ;;  %v1766_v61 = vmul.f32 0.70710677, %v1750_v27  ;;  %2584 = verf.f32 %v1765_v46 }
 0x646   : > { %v1758_v5 = vmul.f32 0.5, %v1750_v27 }
 0x647   : > { %v1767_v34 = vmul.f32 0.70710677, %v1751_v36  ;;  %v1752_v49 = vadd.f32 %v2135_v8, %v1738_v47  ;;  %2586 = verf.f32 %v1766_v61  ;;  %v1759_v23 = vmul.f32 0.5, %v1751_v36  ;;  %v2596_v36 = vld [vmem:[%s3080_s30 + $0x30] sm:$0xff] }
 0x648   : > { %v2577_v28 = vpop.eup %2576 }
 0x649   : > { %v2579_v50 = vpop.eup %2578  ;;  %2588 = verf.f32 %v1767_v34  ;;  %v1768_v38 = vmul.f32 0.70710677, %v1752_v49  ;;  %v1780_v1 = vadd.f32 1.0, %v2577_v28  ;;  %v1760_v12 = vmul.f32 0.5, %v1752_v49  ;;  %v2597_v49 = vld [vmem:[%s3080_s30 + $0x20] sm:$0xff] }
 0x64a   : > { %v2581_v35 = vpop.eup %2580  ;;  %v1779_v39 = vadd.f32 1.0, %v2579_v50 }
 0x64b   : > { %2590 = verf.f32 %v1768_v38  ;;  %v1777_v52 = vadd.f32 1.0, %v2581_v35  ;;  %v1788_v60 = vmul.f32 %v1780_v1, %v1756_v56  ;;  %v2598_v38 = vld [vmem:[%s3080_s30 + $0x38] sm:$0xff]  ;;  %v2599_v1 = vld [vmem:[%s3080_s30 + $0x28] sm:$0xff] }
 0x64c   : > { %v2583_v53 = vpop.eup %2582  ;;  %v1787_v0 = vmul.f32 %v1779_v39, %v1755_v59 }
 0x64d   : > { %v1778_v58 = vadd.f32 1.0, %v2583_v53  ;;  %v1785_v62 = vmul.f32 %v1777_v52, %v1753_v4 }
 0x64e   : > { %v1794_v6 = vpack.c.bf16 %v1788_v60, %v1787_v0 }
 0x64f   : > { %v1786_v63 = vmul.f32 %v1778_v58, %v1754_v57  ;;  %v2585_v43 = vpop.eup %2584 }
 0x650   : > { %v1781_v3 = vadd.f32 1.0, %v2585_v43 }
 0x651   : > { %v2587_v2 = vpop.eup %2586  ;;  %v1793_v55 = vpack.c.bf16 %v1786_v63, %v1785_v62 }
 0x652   : > { %v1782_v9 = vadd.f32 1.0, %v2587_v2  ;;  %v1789_v8 = vmul.f32 %v1781_v3, %v1757_v7 }
 0x653   : > { %v2589_v10 = vpop.eup %2588  ;;  %2332 = vmatprep.mubr.bf16.mxu0 %v1793_v55 }
 0x654   : > { %2333 = vmatmul.mubr.bf16.vlgmr.msra.gmra.mrb[24].mxu0 %v1794_v6  ;;  %v1790_v14 = vmul.f32 %v1782_v9, %v1758_v5  ;;  %v1783_v16 = vadd.f32 1.0, %v2589_v10 }
 0x655   : > { %v2591_v17 = vpop.eup %2590 }
 0x656   : > { %v1795_v18 = vpack.c.bf16 %v1790_v14, %v1789_v8  ;;  %v1784_v25 = vadd.f32 1.0, %v2591_v17  ;;  %v1791_v11 = vmul.f32 %v1783_v16, %v1759_v23 }
 0x658   : > { %2336 = vmatprep.mubr.bf16.mxu1 %v1795_v18  ;;  %v1792_v45 = vmul.f32 %v1784_v25, %v1760_v12 }
 0x65a   : > { %v1796_v26 = vpack.c.bf16 %v1792_v45, %v1791_v11 }
 0x65c   : > { %2337 = vmatmul.mubr.bf16.vlgmr.msra.gmra.mrb[24].mxu1 %v1796_v26 }
 0x727   : > { %v2334_v30 = vpop.f32.mrb[24].mxu0 }
 0x728   : > { %v1911_v33 = vadd.f32 %v2334_v30, %v2136_v29  ;;  %v1902_v48 = vpop.f32.mrb[25].mxu0 }
 0x729   : > { %v1903_v19 = vadd.f32 %v2136_v29, %v1902_v48  ;;  %v2335_v37 = vpop.f32.mrb[26].mxu0 }
 0x72a   : > { %v1935_v51 = vadd.f32 %v2592_v15, %v1911_v33  ;;  %v1914_v13 = vadd.f32 %v2335_v37, %v2136_v29  ;;  %v1905_v21 = vpop.f32.mrb[27].mxu0 }
 0x72b   : > { %v1933_v22 = vadd.f32 %v2593_v40, %v1903_v19  ;;  %v1906_v54 = vadd.f32 %v2136_v29, %v1905_v21 }
 0x72c   : > { %1943 = vst [vmem:[%s3318_s9 + $0x10] sm:$0xff] %v1935_v51  ;;  %v1936_v24 = vadd.f32 %v2594_v41, %v1914_v13 }
 0x72d   : > { %1941 = vst [vmem:[%s3318_s9] sm:$0xff] %v1933_v22  ;;  %v1934_v42 = vadd.f32 %v2595_v20, %v1906_v54 }
 0x72e   : > { %1944 = vst [vmem:[%s3318_s9 + $0x18] sm:$0xff] %v1936_v24 }
 0x72f   : > { %1942 = vst [vmem:[%s3318_s9 + $0x8] sm:$0xff] %v1934_v42  ;;  %v2338_v44 = vpop.f32.mrb[24].mxu1 }
 0x730   : > { %v1927_v31 = vadd.f32 %v2338_v44, %v2136_v29  ;;  %v1918_v32 = vpop.f32.mrb[25].mxu1 }
 0x731   : > { %v1919_v27 = vadd.f32 %v2136_v29, %v1918_v32  ;;  %v2339_v46 = vpop.f32.mrb[26].mxu1 }
 0x732   : > { %v1939_v47 = vadd.f32 %v2596_v36, %v1927_v31  ;;  %v1930_v61 = vadd.f32 %v2339_v46, %v2136_v29  ;;  %v1921_v34 = vpop.f32.mrb[27].mxu1 }
 0x733   : > { %v1937_v28 = vadd.f32 %v2597_v49, %v1919_v27  ;;  %v1922_v50 = vadd.f32 %v2136_v29, %v1921_v34 }
 0x734   : > { %1947 = vst [vmem:[%s3318_s9 + $0x30] sm:$0xff] %v1939_v47  ;;  %v1940_v35 = vadd.f32 %v2598_v38, %v1930_v61 }
 0x735   : > { %1945 = vst [vmem:[%s3318_s9 + $0x20] sm:$0xff] %v1937_v28  ;;  %v1938_v52 = vadd.f32 %v2599_v1, %v1922_v50 }
 0x736   : > { %1948 = vst [vmem:[%s3318_s9 + $0x38] sm:$0xff] %v1940_v35 }
 0x737   : > { %1946 = vst [vmem:[%s3318_s9 + $0x28] sm:$0xff] %v1938_v52 }
 0x738   : > { %2727 = shalt.err (!%p2724_p4)
}
 0x739   : > { %s2728_s30 = scalar_lea.hbm %s3337_s20, 1024  ;;  %s2732_s9 = scalar_lea.hbm %s3430_s16, 2048 }
 0x73a   : > { %p2729_p9 = scmp.ne.s32.totalorder %s3337_s20, %s2728_s30  ;;  %p2733_p8 = scmp.lt.u32.totalorder %s3337_s20, %s3430_s16 }
 0x73b   : > { %p2734_p13 = scmp.lt.u32.totalorder %s2732_s9, %s2728_s30  ;;  %p2736_p10 = scmp.lt.u32.totalorder %s2728_s30, %s3337_s20 }
 0x73c   : > { %p2730_p0 = pnand %p2729_p9, %p3026_p5 }
 0x73d   : > { %p2735_p6 = por %p2734_p13, %p2733_p8 }
 0x73e   : > { %p2731_p11 = pneg %p2730_p0 }
 0x73f   : > { %p2737_p3 = por %p2736_p10, %p2735_p6 }
 0x741   : > { %p2738_p7 = pnand %p2737_p3, %p2731_p11 }
 0x743   : > { %2741 = shalt.err (!%p2738_p7)
}
 0x744   : > { %s2800_s29 = smov 128   ;;  %s2801_s18 = smov 8  }
 0x745   : > { %2370 = dma.vmem_to_hbm [thread:$0]  (%p3026_p5), %s3329_s23, 1024, %s3337_s20, %s1950_s25, %s2800_s29, %s2800_s29, %s2801_s18  }
 0x746 PF: > { %s3431_s21 = sld [smem:[#allocation16_spill]]  ;;  %s3432_s24 = sld [smem:[#allocation17_spill]] }
 0x747   : > { %p3434_p1 = scmp.ge.s32.totalorder %s2788_s28, 2 }
 0x74c   : > { %s1978_s22 = sand.u32 1, %s3431_s21   ;;  %p3433_p12 = scmp.ne.s32.totalorder %s3432_s24, 0 }
 0x74d   : > { %s1979_s30 = scalar_lea.sflag [#allocation5], %s1978_s22 }
 0x74e   : > { %p2387_p2 = pnand %p3434_p1, %p3433_p12 }
 0x750   : > { %2771 = dma.done.wait (!%p2387_p2), %s1979_s30, 1024  }
 0x751   : > { %2773 = vsyncadd (!%p2387_p2), %s1979_s30, 4294966272  ;;  %p28_p4 = scmp.ge.s32.totalorder %s3012_s13, 4   ;;  %s3435_s25 = smov %s2780_s26 }
 0x752   : > { %s3436_s26 = smov %s2784_s27  ;;  %s3437_s27 = smov %s3022_s10 }
 0x753   : > { %s3438_s28 = smov %s3012_s13  ;;  %30 = sbr.rel (!%p28_p4) target bundleno = 13 (0xd), region = 129 }
 0x75a   :  { %1984 = vsyncpa [#allocation4], 1 }
 0x75b   :  { %1986 = vsyncpa [#allocation4 + $0x1], 1 }
 0x75c   :  { %1987 = vsyncpa [#allocation7], 1 }
 0x75d   :  { %1988 = vsyncpa [#allocation10], 1 }
 0x75e   :  { %1989 = vsyncpa [#allocation5], 1 }
 0x75f   :  { %1991 = vsyncpa [#allocation5 + $0x1], 1 }

</bundles_post_ra>
